<compile_context>
chip_gen: v5e
topology: v5e:2x2
jax: 0.10.0
libtpu: 0.0.40
codegen_flags: <defaults>
</compile_context>

<pallas_src>
import functools

import numpy as np

import jax
import jax.numpy as jnp
from jax.experimental import pallas as pl
from jax.experimental.pallas import tpu as pltpu

K = 5            # Conv1d kernel size
PAD = 2          # "same" padding for kernel_size=5, stride=1
NUM_BLOCKS = 4
FC_IN = 32       # nn.Linear(32, 20) is hardcoded in the reference module
FC_HIDDEN = 20


def _round8(n):
    return (n + 7) // 8 * 8


# ----------------------------------------------------------------------------
# Parameter-slab layout: every constant lives at a static, 8-row-aligned offset
# of one (rows, lanes) f32 slab.
# ----------------------------------------------------------------------------
def _build_layout(in_channels, first_width, in_length):
    widths = tuple(first_width * (2 ** i) for i in range(NUM_BLOCKS))
    off = {}
    rows = 0

    def alloc(name, n):
        nonlocal rows
        off[name] = rows
        rows += _round8(n)

    cin = in_channels
    for i, cout in enumerate(widths):
        alloc(f"w{i}a", K * cin)      # (K*Cin, Cout) im2col-layout conv weight
        alloc(f"b{i}a", 1)            # (1, Cout)
        alloc(f"w{i}b", K * cout)
        alloc(f"b{i}b", 1)
        cin = cout
    alloc("fc1w", FC_IN)              # (32, 20)
    alloc("fc1b", 1)
    alloc("fc2w", FC_HIDDEN)          # (20, num_classes)
    alloc("fc2b", 1)

    seq = in_length
    for i in range(NUM_BLOCKS):
        alloc(f"mask{i}", K * seq)    # per-tap boundary masks, column 0 only
        alloc(f"sel{i}", seq // 2 if i < NUM_BLOCKS - 1 else 1)
        seq //= 2

    lanes = max(128, ((in_length + 127) // 128) * 128)
    return off, widths, _round8(rows), lanes


def pack_params(params, in_channels, first_width, in_length):
    """Pack weights, biases, pooling selection matrices and conv boundary
    masks into one f32 VMEM slab (built once, outside jit)."""
    off, widths, rows, lanes = _build_layout(in_channels, first_width, in_length)
    slab = np.zeros((rows, lanes), np.float32)

    def put(name, arr):
        a = np.asarray(arr, dtype=np.float32)
        slab[off[name]:off[name] + a.shape[0], :a.shape[1]] = a

    for i, blk in enumerate(params["blocks"]):
        put(f"w{i}a", blk["w0"])
        put(f"b{i}a", blk["b0"])
        put(f"w{i}b", blk["w1"])
        put(f"b{i}b", blk["b1"])
    put("fc1w", params["fc"]["w1"])
    put("fc1b", params["fc"]["b1"])
    put("fc2w", params["fc"]["w2"])
    put("fc2b", params["fc"]["b2"])

    seq = in_length
    for i in range(NUM_BLOCKS):
        idx = np.arange(seq)
        mask = np.zeros((K * seq, 1), np.float32)   # tap k at rows [k*seq, (k+1)*seq)
        for k in range(K):
            mask[k * seq:(k + 1) * seq, 0] = (
                (idx + k - PAD >= 0) & (idx + k - PAD < seq)).astype(np.float32)
        put(f"mask{i}", mask)

        if i < NUM_BLOCKS - 1:
            sel = np.zeros((seq // 2, seq), np.float32)      # even-row select (maxpool)
            sel[np.arange(seq // 2), 2 * np.arange(seq // 2)] = 1.0
        else:
            sel = np.zeros((1, seq), np.float32)             # maxpool + adaptive avg fused
            sel[0, 0:seq:2] = 2.0 / seq
        put(f"sel{i}", sel)
        seq //= 2

    return jnp.asarray(slab), off, widths


# ----------------------------------------------------------------------------
# Fused forward kernel: whole network for ONE batch element per grid step.
# ----------------------------------------------------------------------------
def _fused_forward_kernel(x_ref, p_ref, o_ref, *, in_length, in_channels,
                          widths, num_classes, off, mxu_dtype):
    f32 = jnp.float32

    def conv5_relu(x, seq, cin, cout, wname, bname, mname):
        wo = off[wname]
        mo = off[mname]
        # Center tap: no shift, no boundary mask.
        acc = jnp.dot(x.astype(mxu_dtype),
                      p_ref[wo + PAD * cin: wo + (PAD + 1) * cin, 0:cout]
                      .astype(mxu_dtype),
                      preferred_element_type=f32)
        for k in (0, 1, 3, 4):
            # tap_k[i] = x[i + k - PAD]  (sublane roll on the otherwise-idle XLU)
            xk = pltpu.roll(x, (PAD - k) % seq, axis=0)
            # Precomputed 0/1 boundary mask zeros the rows the roll wrapped.
            mk = p_ref[mo + k * seq: mo + (k + 1) * seq, 0:1]
            acc = acc + jnp.dot((xk * mk).astype(mxu_dtype),
                                p_ref[wo + k * cin: wo + (k + 1) * cin, 0:cout]
                                .astype(mxu_dtype),
                                preferred_element_type=f32)
        bias = p_ref[off[bname]: off[bname] + 1, 0:cout]
        return jnp.maximum(acc + bias, 0.0)

    x = x_ref[0].astype(f32)                         # (L, Cin)
    seq = in_length
    cin = in_channels
    for i, cout in enumerate(widths):
        x = conv5_relu(x, seq, cin, cout, f"w{i}a", f"b{i}a", f"mask{i}")
        x = conv5_relu(x, seq, cout, cout, f"w{i}b", f"b{i}b", f"mask{i}")
        # MaxPool1d(2): pairwise max via one roll, then ONE precomputed
        # selection matmul.  Last block's matrix also averages (AdaptiveAvgPool1d(1)).
        m = jnp.maximum(x, pltpu.roll(x, seq - 1, axis=0))   # m[i] = max(x[i], x[i+1])
        nsel = seq // 2 if i < NUM_BLOCKS - 1 else 1
        so = off[f"sel{i}"]
        x = jnp.dot(p_ref[so: so + nsel, 0:seq].astype(mxu_dtype),
                    m.astype(mxu_dtype), preferred_element_type=f32)
        seq //= 2
        cin = cout

    # Classifier: Linear(32, 20) -> ReLU -> Linear(20, num_classes); x is (1, 32).
    h = jnp.dot(x.astype(mxu_dtype),
                p_ref[off["fc1w"]: off["fc1w"] + FC_IN, 0:FC_HIDDEN].astype(mxu_dtype),
                preferred_element_type=f32) + p_ref[off["fc1b"]: off["fc1b"] + 1, 0:FC_HIDDEN]
    h = jnp.maximum(h, 0.0)
    y = jnp.dot(h.astype(mxu_dtype),
                p_ref[off["fc2w"]: off["fc2w"] + FC_HIDDEN, 0:num_classes].astype(mxu_dtype),
                preferred_element_type=f32) + p_ref[off["fc2b"]: off["fc2b"] + 1, 0:num_classes]
    o_ref[0] = y.astype(o_ref.dtype)                 # (1, num_classes) block


# ----------------------------------------------------------------------------
# Wrapper: one pallas_call, grid over batch, 2 inputs (x + packed param slab).
# ----------------------------------------------------------------------------
def custom_model_forward(x_ncl, slab, *, off, widths, num_classes,
                         mxu_dtype=jnp.float32):
    N, Cin, L = x_ncl.shape
    assert L % (2 ** NUM_BLOCKS) == 0, "in_length must be divisible by 16"
    assert widths[-1] == FC_IN, "nn.Linear(32, 20) hardcodes first_width == 4"
    x_nlc = jnp.transpose(x_ncl, (0, 2, 1))          # (N, L, Cin): rows = positions

    kernel = functools.partial(
        _fused_forward_kernel, in_length=L, in_channels=Cin, widths=widths,
        num_classes=num_classes, off=off, mxu_dtype=mxu_dtype)

    out = pl.pallas_call(
        kernel,
        out_shape=jax.ShapeDtypeStruct((N, 1, num_classes), x_ncl.dtype),
        grid=(N,),
        in_specs=[
            pl.BlockSpec((1, L, Cin), lambda n: (n, 0, 0)),   # per-batch, pipelined
            pl.BlockSpec(slab.shape, lambda n: (0, 0)),       # params, DMA'd once
        ],
        out_specs=pl.BlockSpec((1, 1, num_classes), lambda n: (n, 0, 0)),
        compiler_params=pltpu.CompilerParams(
            dimension_semantics=("parallel",)),               # 2 TCs on v7x
    )(x_nlc, slab)
    return out.reshape(N, num_classes)


# ----------------------------------------------------------------------------
# Parameter init (deterministic; kaiming_normal fan_out like the module).
# Conv weights stored in im2col layout (K*Cin, Cout); biases as (1, Cout).
# ----------------------------------------------------------------------------
def init_params(key, in_channels, first_width, num_classes):
    assert first_width * 8 == FC_IN, "nn.Linear(32, 20) hardcodes first_width == 4"
    params = {"blocks": [], "fc": {}}
    cin = in_channels
    for i in range(NUM_BLOCKS):
        cout = first_width * (2 ** i)
        key, k0, k1, kb0, kb1 = jax.random.split(key, 5)
        std = jnp.sqrt(2.0 / (cout * K))                  # fan_out = Cout * K
        w0 = jax.random.normal(k0, (cout, cin, K), jnp.float32) * std
        w1 = jax.random.normal(k1, (cout, cout, K), jnp.float32) * std
        params["blocks"].append({
            "w0": jnp.transpose(w0, (2, 1, 0)).reshape(K * cin, cout),
            "b0": (jax.random.normal(kb0, (cout,), jnp.float32) * 0.01).reshape(1, cout),
            "w1": jnp.transpose(w1, (2, 1, 0)).reshape(K * cout, cout),
            "b1": (jax.random.normal(kb1, (cout,), jnp.float32) * 0.01).reshape(1, cout),
        })
        cin = cout
    key, kf1, kf2, kb1, kb2 = jax.random.split(key, 5)
    wf1 = jax.random.normal(kf1, (FC_HIDDEN, FC_IN), jnp.float32) * jnp.sqrt(2.0 / FC_HIDDEN)
    wf2 = jax.random.normal(kf2, (num_classes, FC_HIDDEN), jnp.float32) * jnp.sqrt(
        2.0 / num_classes)
    params["fc"] = {
        "w1": wf1.T,
        "b1": (jax.random.normal(kb1, (FC_HIDDEN,), jnp.float32) * 0.01).reshape(1, FC_HIDDEN),
        "w2": wf2.T,
        "b2": (jax.random.normal(kb2, (num_classes,), jnp.float32) * 0.01
               ).reshape(1, num_classes),
    }
    return params


# ----------------------------------------------------------------------------
# Pure-JAX reference for the correctness check.
# ----------------------------------------------------------------------------
def reference_forward(x_ncl, params):
    x = x_ncl
    for blk in params["blocks"]:
        for (w_col, b) in ((blk["w0"], blk["b0"]), (blk["w1"], blk["b1"])):
            cout = w_col.shape[1]
            w_oik = jnp.transpose(w_col.reshape(K, -1, cout), (2, 1, 0))  # (Cout,Cin,K)
            x = jax.lax.conv_general_dilated(
                x, w_oik, window_strides=(1,), padding=((PAD, PAD),),
                dimension_numbers=("NCH", "OIH", "NCH"))
            x = jnp.maximum(x + b[0][None, :, None], 0.0)
        N, C, L = x.shape
        x = jnp.max(x.reshape(N, C, L // 2, 2), axis=-1)
    x = jnp.mean(x, axis=-1)                        # AdaptiveAvgPool1d(1) -> (N, C)
    fc = params["fc"]
    h = jnp.maximum(x @ fc["w1"] + fc["b1"][0], 0.0)
    return h @ fc["w2"] + fc["b2"][0]


if __name__ == "__main__":
    in_length, in_channels, first_width, num_classes = 64, 2, 4, 5
    batch = 2

    key = jax.random.PRNGKey(0)
    pkey, xkey = jax.random.split(key)
    params = init_params(pkey, in_channels, first_width, num_classes)
    x = jax.random.normal(xkey, (batch, in_channels, in_length), jnp.float32)

    slab, off, widths = pack_params(params, in_channels, first_width, in_length)

    fwd = jax.jit(functools.partial(custom_model_forward, off=off, widths=widths,
                                    num_classes=num_classes))
    y = jax.block_until_ready(fwd(x, slab))

    y_ref = jax.block_until_ready(reference_forward(x, params))
    assert y.shape == (batch, num_classes), y.shape
    assert jnp.allclose(y, y_ref, rtol=1e-4, atol=1e-4), (y, y_ref)

    print("KERNEL_OK")
</pallas_src>

<mosaic_0001>
module attributes {stable_mosaic.version = 11 : i64} {
  func.func @_fused_forward_kernel(%arg0: i32, %arg1: memref<1x64x2xf32, #tpu.memory_space<vmem>>, %arg2: memref<1264x128xf32, #tpu.memory_space<vmem>>, %arg3: memref<1x1x5xf32, #tpu.memory_space<vmem>>) attributes {dimension_semantics = [#tpu.dimension_semantics<parallel>], iteration_bounds = array<i64: 2>, scalar_prefetch = 0 : i64, scratch_operands = 0 : i64, tpu.core_type = #tpu.core_type<tc>, window_params = [{transform_indices = @transform_0, window_bounds = array<i64: 1, 64, 2>}, {pipeline_mode = #tpu.pipeline_mode<synchronous>, transform_indices = @transform_1, window_bounds = array<i64: 1264, 128>}, {transform_indices = @transform_2, window_bounds = array<i64: 1, 1, 5>}]} {
    %c0 = arith.constant 0 : index
    %c0_0 = arith.constant 0 : index
    %c0_1 = arith.constant 0 : index
    %0 = vector.load %arg1[%c0, %c0_0, %c0_1] : memref<1x64x2xf32, #tpu.memory_space<vmem>>, vector<1x64x2xf32>
    %1 = vector.shape_cast %0 : vector<1x64x2xf32> to vector<64x2xf32>
    %c4 = arith.constant 4 : index
    %c0_2 = arith.constant 0 : index
    %2 = vector.load %arg2[%c4, %c0_2] : memref<1264x128xf32, #tpu.memory_space<vmem>>, vector<2x4xf32>
    %cst = arith.constant dense<0.000000e+00> : vector<64x4xf32>
    %3 = tpu.matmul %1, %2, %cst {dimension_numbers = #tpu.dot_dimension_numbers<[1], [0], [0], [1], [0, 0, 1, 1], [], []>} : vector<64x2xf32>, vector<2x4xf32>, vector<64x4xf32> -> vector<64x4xf32>
    %c2_i32 = arith.constant 2 : i32
    %4 = tpu.dynamic_rotate %1 by %c2_i32 dim 0 : vector<64x2xf32>, i32 -> vector<64x2xf32>
    %c600 = arith.constant 600 : index
    %c0_3 = arith.constant 0 : index
    %5 = vector.load %arg2[%c600, %c0_3] : memref<1264x128xf32, #tpu.memory_space<vmem>>, vector<64x1xf32>
    %6 = vector.broadcast %5 : vector<64x1xf32> to vector<64x2xf32>
    %7 = arith.mulf %4, %6 : vector<64x2xf32>
    %c0_4 = arith.constant 0 : index
    %c0_5 = arith.constant 0 : index
    %8 = vector.load %arg2[%c0_4, %c0_5] : memref<1264x128xf32, #tpu.memory_space<vmem>>, vector<2x4xf32>
    %cst_6 = arith.constant dense<0.000000e+00> : vector<64x4xf32>
    %9 = tpu.matmul %7, %8, %cst_6 {dimension_numbers = #tpu.dot_dimension_numbers<[1], [0], [0], [1], [0, 0, 1, 1], [], []>} : vector<64x2xf32>, vector<2x4xf32>, vector<64x4xf32> -> vector<64x4xf32>
    %10 = arith.addf %3, %9 : vector<64x4xf32>
    %c1_i32 = arith.constant 1 : i32
    %11 = tpu.dynamic_rotate %1 by %c1_i32 dim 0 : vector<64x2xf32>, i32 -> vector<64x2xf32>
    %c664 = arith.constant 664 : index
    %c0_7 = arith.constant 0 : index
    %12 = vector.load %arg2[%c664, %c0_7] : memref<1264x128xf32, #tpu.memory_space<vmem>>, vector<64x1xf32>
    %13 = vector.broadcast %12 : vector<64x1xf32> to vector<64x2xf32>
    %14 = arith.mulf %11, %13 : vector<64x2xf32>
    %c2 = arith.constant 2 : index
    %c0_8 = arith.constant 0 : index
    %15 = vector.load %arg2[%c2, %c0_8] : memref<1264x128xf32, #tpu.memory_space<vmem>>, vector<2x4xf32>
    %cst_9 = arith.constant dense<0.000000e+00> : vector<64x4xf32>
    %16 = tpu.matmul %14, %15, %cst_9 {dimension_numbers = #tpu.dot_dimension_numbers<[1], [0], [0], [1], [0, 0, 1, 1], [], []>} : vector<64x2xf32>, vector<2x4xf32>, vector<64x4xf32> -> vector<64x4xf32>
    %17 = arith.addf %10, %16 : vector<64x4xf32>
    %c63_i32 = arith.constant 63 : i32
    %18 = tpu.dynamic_rotate %1 by %c63_i32 dim 0 : vector<64x2xf32>, i32 -> vector<64x2xf32>
    %c792 = arith.constant 792 : index
    %c0_10 = arith.constant 0 : index
    %19 = vector.load %arg2[%c792, %c0_10] : memref<1264x128xf32, #tpu.memory_space<vmem>>, vector<64x1xf32>
    %20 = vector.broadcast %19 : vector<64x1xf32> to vector<64x2xf32>
    %21 = arith.mulf %18, %20 : vector<64x2xf32>
    %c6 = arith.constant 6 : index
    %c0_11 = arith.constant 0 : index
    %22 = vector.load %arg2[%c6, %c0_11] : memref<1264x128xf32, #tpu.memory_space<vmem>>, vector<2x4xf32>
    %cst_12 = arith.constant dense<0.000000e+00> : vector<64x4xf32>
    %23 = tpu.matmul %21, %22, %cst_12 {dimension_numbers = #tpu.dot_dimension_numbers<[1], [0], [0], [1], [0, 0, 1, 1], [], []>} : vector<64x2xf32>, vector<2x4xf32>, vector<64x4xf32> -> vector<64x4xf32>
    %24 = arith.addf %17, %23 : vector<64x4xf32>
    %c62_i32 = arith.constant 62 : i32
    %25 = tpu.dynamic_rotate %1 by %c62_i32 dim 0 : vector<64x2xf32>, i32 -> vector<64x2xf32>
    %c856 = arith.constant 856 : index
    %c0_13 = arith.constant 0 : index
    %26 = vector.load %arg2[%c856, %c0_13] : memref<1264x128xf32, #tpu.memory_space<vmem>>, vector<64x1xf32>
    %27 = vector.broadcast %26 : vector<64x1xf32> to vector<64x2xf32>
    %28 = arith.mulf %25, %27 : vector<64x2xf32>
    %c8 = arith.constant 8 : index
    %c0_14 = arith.constant 0 : index
    %29 = vector.load %arg2[%c8, %c0_14] : memref<1264x128xf32, #tpu.memory_space<vmem>>, vector<2x4xf32>
    %cst_15 = arith.constant dense<0.000000e+00> : vector<64x4xf32>
    %30 = tpu.matmul %28, %29, %cst_15 {dimension_numbers = #tpu.dot_dimension_numbers<[1], [0], [0], [1], [0, 0, 1, 1], [], []>} : vector<64x2xf32>, vector<2x4xf32>, vector<64x4xf32> -> vector<64x4xf32>
    %31 = arith.addf %24, %30 : vector<64x4xf32>
    %c16 = arith.constant 16 : index
    %c0_16 = arith.constant 0 : index
    %32 = vector.load %arg2[%c16, %c0_16] : memref<1264x128xf32, #tpu.memory_space<vmem>>, vector<1x4xf32>
    %33 = vector.broadcast %32 : vector<1x4xf32> to vector<64x4xf32>
    %34 = arith.addf %31, %33 : vector<64x4xf32>
    %cst_17 = arith.constant 0.000000e+00 : f32
    %35 = vector.broadcast %cst_17 : f32 to vector<64x4xf32>
    %36 = arith.maximumf %34, %35 : vector<64x4xf32>
    %c32 = arith.constant 32 : index
    %c0_18 = arith.constant 0 : index
    %37 = vector.load %arg2[%c32, %c0_18] : memref<1264x128xf32, #tpu.memory_space<vmem>>, vector<4x4xf32>
    %cst_19 = arith.constant dense<0.000000e+00> : vector<64x4xf32>
    %38 = tpu.matmul %36, %37, %cst_19 {dimension_numbers = #tpu.dot_dimension_numbers<[1], [0], [0], [1], [0, 0, 1, 1], [], []>} : vector<64x4xf32>, vector<4x4xf32>, vector<64x4xf32> -> vector<64x4xf32>
    %c2_i32_20 = arith.constant 2 : i32
    %39 = tpu.dynamic_rotate %36 by %c2_i32_20 dim 0 : vector<64x4xf32>, i32 -> vector<64x4xf32>
    %c600_21 = arith.constant 600 : index
    %c0_22 = arith.constant 0 : index
    %40 = vector.load %arg2[%c600_21, %c0_22] : memref<1264x128xf32, #tpu.memory_space<vmem>>, vector<64x1xf32>
    %41 = vector.broadcast %40 : vector<64x1xf32> to vector<64x4xf32>
    %42 = arith.mulf %39, %41 : vector<64x4xf32>
    %c24 = arith.constant 24 : index
    %c0_23 = arith.constant 0 : index
    %43 = vector.load %arg2[%c24, %c0_23] : memref<1264x128xf32, #tpu.memory_space<vmem>>, vector<4x4xf32>
    %cst_24 = arith.constant dense<0.000000e+00> : vector<64x4xf32>
    %44 = tpu.matmul %42, %43, %cst_24 {dimension_numbers = #tpu.dot_dimension_numbers<[1], [0], [0], [1], [0, 0, 1, 1], [], []>} : vector<64x4xf32>, vector<4x4xf32>, vector<64x4xf32> -> vector<64x4xf32>
    %45 = arith.addf %38, %44 : vector<64x4xf32>
    %c1_i32_25 = arith.constant 1 : i32
    %46 = tpu.dynamic_rotate %36 by %c1_i32_25 dim 0 : vector<64x4xf32>, i32 -> vector<64x4xf32>
    %c664_26 = arith.constant 664 : index
    %c0_27 = arith.constant 0 : index
    %47 = vector.load %arg2[%c664_26, %c0_27] : memref<1264x128xf32, #tpu.memory_space<vmem>>, vector<64x1xf32>
    %48 = vector.broadcast %47 : vector<64x1xf32> to vector<64x4xf32>
    %49 = arith.mulf %46, %48 : vector<64x4xf32>
    %c28 = arith.constant 28 : index
    %c0_28 = arith.constant 0 : index
    %50 = vector.load %arg2[%c28, %c0_28] : memref<1264x128xf32, #tpu.memory_space<vmem>>, vector<4x4xf32>
    %cst_29 = arith.constant dense<0.000000e+00> : vector<64x4xf32>
    %51 = tpu.matmul %49, %50, %cst_29 {dimension_numbers = #tpu.dot_dimension_numbers<[1], [0], [0], [1], [0, 0, 1, 1], [], []>} : vector<64x4xf32>, vector<4x4xf32>, vector<64x4xf32> -> vector<64x4xf32>
    %52 = arith.addf %45, %51 : vector<64x4xf32>
    %c63_i32_30 = arith.constant 63 : i32
    %53 = tpu.dynamic_rotate %36 by %c63_i32_30 dim 0 : vector<64x4xf32>, i32 -> vector<64x4xf32>
    %c792_31 = arith.constant 792 : index
    %c0_32 = arith.constant 0 : index
    %54 = vector.load %arg2[%c792_31, %c0_32] : memref<1264x128xf32, #tpu.memory_space<vmem>>, vector<64x1xf32>
    %55 = vector.broadcast %54 : vector<64x1xf32> to vector<64x4xf32>
    %56 = arith.mulf %53, %55 : vector<64x4xf32>
    %c36 = arith.constant 36 : index
    %c0_33 = arith.constant 0 : index
    %57 = vector.load %arg2[%c36, %c0_33] : memref<1264x128xf32, #tpu.memory_space<vmem>>, vector<4x4xf32>
    %cst_34 = arith.constant dense<0.000000e+00> : vector<64x4xf32>
    %58 = tpu.matmul %56, %57, %cst_34 {dimension_numbers = #tpu.dot_dimension_numbers<[1], [0], [0], [1], [0, 0, 1, 1], [], []>} : vector<64x4xf32>, vector<4x4xf32>, vector<64x4xf32> -> vector<64x4xf32>
    %59 = arith.addf %52, %58 : vector<64x4xf32>
    %c62_i32_35 = arith.constant 62 : i32
    %60 = tpu.dynamic_rotate %36 by %c62_i32_35 dim 0 : vector<64x4xf32>, i32 -> vector<64x4xf32>
    %c856_36 = arith.constant 856 : index
    %c0_37 = arith.constant 0 : index
    %61 = vector.load %arg2[%c856_36, %c0_37] : memref<1264x128xf32, #tpu.memory_space<vmem>>, vector<64x1xf32>
    %62 = vector.broadcast %61 : vector<64x1xf32> to vector<64x4xf32>
    %63 = arith.mulf %60, %62 : vector<64x4xf32>
    %c40 = arith.constant 40 : index
    %c0_38 = arith.constant 0 : index
    %64 = vector.load %arg2[%c40, %c0_38] : memref<1264x128xf32, #tpu.memory_space<vmem>>, vector<4x4xf32>
    %cst_39 = arith.constant dense<0.000000e+00> : vector<64x4xf32>
    %65 = tpu.matmul %63, %64, %cst_39 {dimension_numbers = #tpu.dot_dimension_numbers<[1], [0], [0], [1], [0, 0, 1, 1], [], []>} : vector<64x4xf32>, vector<4x4xf32>, vector<64x4xf32> -> vector<64x4xf32>
    %66 = arith.addf %59, %65 : vector<64x4xf32>
    %c48 = arith.constant 48 : index
    %c0_40 = arith.constant 0 : index
    %67 = vector.load %arg2[%c48, %c0_40] : memref<1264x128xf32, #tpu.memory_space<vmem>>, vector<1x4xf32>
    %68 = vector.broadcast %67 : vector<1x4xf32> to vector<64x4xf32>
    %69 = arith.addf %66, %68 : vector<64x4xf32>
    %cst_41 = arith.constant 0.000000e+00 : f32
    %70 = vector.broadcast %cst_41 : f32 to vector<64x4xf32>
    %71 = arith.maximumf %69, %70 : vector<64x4xf32>
    %c63_i32_42 = arith.constant 63 : i32
    %72 = tpu.dynamic_rotate %71 by %c63_i32_42 dim 0 : vector<64x4xf32>, i32 -> vector<64x4xf32>
    %73 = arith.maximumf %71, %72 : vector<64x4xf32>
    %c920 = arith.constant 920 : index
    %c0_43 = arith.constant 0 : index
    %74 = vector.load %arg2[%c920, %c0_43] : memref<1264x128xf32, #tpu.memory_space<vmem>>, vector<32x64xf32>
    %cst_44 = arith.constant dense<0.000000e+00> : vector<32x4xf32>
    %75 = tpu.matmul %74, %73, %cst_44 {dimension_numbers = #tpu.dot_dimension_numbers<[1], [0], [0], [1], [0, 0, 1, 1], [], []>} : vector<32x64xf32>, vector<64x4xf32>, vector<32x4xf32> -> vector<32x4xf32>
    %c64 = arith.constant 64 : index
    %c0_45 = arith.constant 0 : index
    %76 = vector.load %arg2[%c64, %c0_45] : memref<1264x128xf32, #tpu.memory_space<vmem>>, vector<4x8xf32>
    %cst_46 = arith.constant dense<0.000000e+00> : vector<32x8xf32>
    %77 = tpu.matmul %75, %76, %cst_46 {dimension_numbers = #tpu.dot_dimension_numbers<[1], [0], [0], [1], [0, 0, 1, 1], [], []>} : vector<32x4xf32>, vector<4x8xf32>, vector<32x8xf32> -> vector<32x8xf32>
    %c2_i32_47 = arith.constant 2 : i32
    %78 = tpu.dynamic_rotate %75 by %c2_i32_47 dim 0 : vector<32x4xf32>, i32 -> vector<32x4xf32>
    %c952 = arith.constant 952 : index
    %c0_48 = arith.constant 0 : index
    %79 = vector.load %arg2[%c952, %c0_48] : memref<1264x128xf32, #tpu.memory_space<vmem>>, vector<32x1xf32>
    %80 = vector.broadcast %79 : vector<32x1xf32> to vector<32x4xf32>
    %81 = arith.mulf %78, %80 : vector<32x4xf32>
    %c56 = arith.constant 56 : index
    %c0_49 = arith.constant 0 : index
    %82 = vector.load %arg2[%c56, %c0_49] : memref<1264x128xf32, #tpu.memory_space<vmem>>, vector<4x8xf32>
    %cst_50 = arith.constant dense<0.000000e+00> : vector<32x8xf32>
    %83 = tpu.matmul %81, %82, %cst_50 {dimension_numbers = #tpu.dot_dimension_numbers<[1], [0], [0], [1], [0, 0, 1, 1], [], []>} : vector<32x4xf32>, vector<4x8xf32>, vector<32x8xf32> -> vector<32x8xf32>
    %84 = arith.addf %77, %83 : vector<32x8xf32>
    %c1_i32_51 = arith.constant 1 : i32
    %85 = tpu.dynamic_rotate %75 by %c1_i32_51 dim 0 : vector<32x4xf32>, i32 -> vector<32x4xf32>
    %c984 = arith.constant 984 : index
    %c0_52 = arith.constant 0 : index
    %86 = vector.load %arg2[%c984, %c0_52] : memref<1264x128xf32, #tpu.memory_space<vmem>>, vector<32x1xf32>
    %87 = vector.broadcast %86 : vector<32x1xf32> to vector<32x4xf32>
    %88 = arith.mulf %85, %87 : vector<32x4xf32>
    %c60 = arith.constant 60 : index
    %c0_53 = arith.constant 0 : index
    %89 = vector.load %arg2[%c60, %c0_53] : memref<1264x128xf32, #tpu.memory_space<vmem>>, vector<4x8xf32>
    %cst_54 = arith.constant dense<0.000000e+00> : vector<32x8xf32>
    %90 = tpu.matmul %88, %89, %cst_54 {dimension_numbers = #tpu.dot_dimension_numbers<[1], [0], [0], [1], [0, 0, 1, 1], [], []>} : vector<32x4xf32>, vector<4x8xf32>, vector<32x8xf32> -> vector<32x8xf32>
    %91 = arith.addf %84, %90 : vector<32x8xf32>
    %c31_i32 = arith.constant 31 : i32
    %92 = tpu.dynamic_rotate %75 by %c31_i32 dim 0 : vector<32x4xf32>, i32 -> vector<32x4xf32>
    %c1048 = arith.constant 1048 : index
    %c0_55 = arith.constant 0 : index
    %93 = vector.load %arg2[%c1048, %c0_55] : memref<1264x128xf32, #tpu.memory_space<vmem>>, vector<32x1xf32>
    %94 = vector.broadcast %93 : vector<32x1xf32> to vector<32x4xf32>
    %95 = arith.mulf %92, %94 : vector<32x4xf32>
    %c68 = arith.constant 68 : index
    %c0_56 = arith.constant 0 : index
    %96 = vector.load %arg2[%c68, %c0_56] : memref<1264x128xf32, #tpu.memory_space<vmem>>, vector<4x8xf32>
    %cst_57 = arith.constant dense<0.000000e+00> : vector<32x8xf32>
    %97 = tpu.matmul %95, %96, %cst_57 {dimension_numbers = #tpu.dot_dimension_numbers<[1], [0], [0], [1], [0, 0, 1, 1], [], []>} : vector<32x4xf32>, vector<4x8xf32>, vector<32x8xf32> -> vector<32x8xf32>
    %98 = arith.addf %91, %97 : vector<32x8xf32>
    %c30_i32 = arith.constant 30 : i32
    %99 = tpu.dynamic_rotate %75 by %c30_i32 dim 0 : vector<32x4xf32>, i32 -> vector<32x4xf32>
    %c1080 = arith.constant 1080 : index
    %c0_58 = arith.constant 0 : index
    %100 = vector.load %arg2[%c1080, %c0_58] : memref<1264x128xf32, #tpu.memory_space<vmem>>, vector<32x1xf32>
    %101 = vector.broadcast %100 : vector<32x1xf32> to vector<32x4xf32>
    %102 = arith.mulf %99, %101 : vector<32x4xf32>
    %c72 = arith.constant 72 : index
    %c0_59 = arith.constant 0 : index
    %103 = vector.load %arg2[%c72, %c0_59] : memref<1264x128xf32, #tpu.memory_space<vmem>>, vector<4x8xf32>
    %cst_60 = arith.constant dense<0.000000e+00> : vector<32x8xf32>
    %104 = tpu.matmul %102, %103, %cst_60 {dimension_numbers = #tpu.dot_dimension_numbers<[1], [0], [0], [1], [0, 0, 1, 1], [], []>} : vector<32x4xf32>, vector<4x8xf32>, vector<32x8xf32> -> vector<32x8xf32>
    %105 = arith.addf %98, %104 : vector<32x8xf32>
    %c80 = arith.constant 80 : index
    %c0_61 = arith.constant 0 : index
    %106 = vector.load %arg2[%c80, %c0_61] : memref<1264x128xf32, #tpu.memory_space<vmem>>, vector<1x8xf32>
    %107 = vector.broadcast %106 : vector<1x8xf32> to vector<32x8xf32>
    %108 = arith.addf %105, %107 : vector<32x8xf32>
    %cst_62 = arith.constant 0.000000e+00 : f32
    %109 = vector.broadcast %cst_62 : f32 to vector<32x8xf32>
    %110 = arith.maximumf %108, %109 : vector<32x8xf32>
    %c104 = arith.constant 104 : index
    %c0_63 = arith.constant 0 : index
    %111 = vector.load %arg2[%c104, %c0_63] : memref<1264x128xf32, #tpu.memory_space<vmem>>, vector<8x8xf32>
    %cst_64 = arith.constant dense<0.000000e+00> : vector<32x8xf32>
    %112 = tpu.matmul %110, %111, %cst_64 {dimension_numbers = #tpu.dot_dimension_numbers<[1], [0], [0], [1], [0, 0, 1, 1], [], []>} : vector<32x8xf32>, vector<8x8xf32>, vector<32x8xf32> -> vector<32x8xf32>
    %c2_i32_65 = arith.constant 2 : i32
    %113 = tpu.dynamic_rotate %110 by %c2_i32_65 dim 0 : vector<32x8xf32>, i32 -> vector<32x8xf32>
    %c952_66 = arith.constant 952 : index
    %c0_67 = arith.constant 0 : index
    %114 = vector.load %arg2[%c952_66, %c0_67] : memref<1264x128xf32, #tpu.memory_space<vmem>>, vector<32x1xf32>
    %115 = vector.broadcast %114 : vector<32x1xf32> to vector<32x8xf32>
    %116 = arith.mulf %113, %115 : vector<32x8xf32>
    %c88 = arith.constant 88 : index
    %c0_68 = arith.constant 0 : index
    %117 = vector.load %arg2[%c88, %c0_68] : memref<1264x128xf32, #tpu.memory_space<vmem>>, vector<8x8xf32>
    %cst_69 = arith.constant dense<0.000000e+00> : vector<32x8xf32>
    %118 = tpu.matmul %116, %117, %cst_69 {dimension_numbers = #tpu.dot_dimension_numbers<[1], [0], [0], [1], [0, 0, 1, 1], [], []>} : vector<32x8xf32>, vector<8x8xf32>, vector<32x8xf32> -> vector<32x8xf32>
    %119 = arith.addf %112, %118 : vector<32x8xf32>
    %c1_i32_70 = arith.constant 1 : i32
    %120 = tpu.dynamic_rotate %110 by %c1_i32_70 dim 0 : vector<32x8xf32>, i32 -> vector<32x8xf32>
    %c984_71 = arith.constant 984 : index
    %c0_72 = arith.constant 0 : index
    %121 = vector.load %arg2[%c984_71, %c0_72] : memref<1264x128xf32, #tpu.memory_space<vmem>>, vector<32x1xf32>
    %122 = vector.broadcast %121 : vector<32x1xf32> to vector<32x8xf32>
    %123 = arith.mulf %120, %122 : vector<32x8xf32>
    %c96 = arith.constant 96 : index
    %c0_73 = arith.constant 0 : index
    %124 = vector.load %arg2[%c96, %c0_73] : memref<1264x128xf32, #tpu.memory_space<vmem>>, vector<8x8xf32>
    %cst_74 = arith.constant dense<0.000000e+00> : vector<32x8xf32>
    %125 = tpu.matmul %123, %124, %cst_74 {dimension_numbers = #tpu.dot_dimension_numbers<[1], [0], [0], [1], [0, 0, 1, 1], [], []>} : vector<32x8xf32>, vector<8x8xf32>, vector<32x8xf32> -> vector<32x8xf32>
    %126 = arith.addf %119, %125 : vector<32x8xf32>
    %c31_i32_75 = arith.constant 31 : i32
    %127 = tpu.dynamic_rotate %110 by %c31_i32_75 dim 0 : vector<32x8xf32>, i32 -> vector<32x8xf32>
    %c1048_76 = arith.constant 1048 : index
    %c0_77 = arith.constant 0 : index
    %128 = vector.load %arg2[%c1048_76, %c0_77] : memref<1264x128xf32, #tpu.memory_space<vmem>>, vector<32x1xf32>
    %129 = vector.broadcast %128 : vector<32x1xf32> to vector<32x8xf32>
    %130 = arith.mulf %127, %129 : vector<32x8xf32>
    %c112 = arith.constant 112 : index
    %c0_78 = arith.constant 0 : index
    %131 = vector.load %arg2[%c112, %c0_78] : memref<1264x128xf32, #tpu.memory_space<vmem>>, vector<8x8xf32>
    %cst_79 = arith.constant dense<0.000000e+00> : vector<32x8xf32>
    %132 = tpu.matmul %130, %131, %cst_79 {dimension_numbers = #tpu.dot_dimension_numbers<[1], [0], [0], [1], [0, 0, 1, 1], [], []>} : vector<32x8xf32>, vector<8x8xf32>, vector<32x8xf32> -> vector<32x8xf32>
    %133 = arith.addf %126, %132 : vector<32x8xf32>
    %c30_i32_80 = arith.constant 30 : i32
    %134 = tpu.dynamic_rotate %110 by %c30_i32_80 dim 0 : vector<32x8xf32>, i32 -> vector<32x8xf32>
    %c1080_81 = arith.constant 1080 : index
    %c0_82 = arith.constant 0 : index
    %135 = vector.load %arg2[%c1080_81, %c0_82] : memref<1264x128xf32, #tpu.memory_space<vmem>>, vector<32x1xf32>
    %136 = vector.broadcast %135 : vector<32x1xf32> to vector<32x8xf32>
    %137 = arith.mulf %134, %136 : vector<32x8xf32>
    %c120 = arith.constant 120 : index
    %c0_83 = arith.constant 0 : index
    %138 = vector.load %arg2[%c120, %c0_83] : memref<1264x128xf32, #tpu.memory_space<vmem>>, vector<8x8xf32>
    %cst_84 = arith.constant dense<0.000000e+00> : vector<32x8xf32>
    %139 = tpu.matmul %137, %138, %cst_84 {dimension_numbers = #tpu.dot_dimension_numbers<[1], [0], [0], [1], [0, 0, 1, 1], [], []>} : vector<32x8xf32>, vector<8x8xf32>, vector<32x8xf32> -> vector<32x8xf32>
    %140 = arith.addf %133, %139 : vector<32x8xf32>
    %c128 = arith.constant 128 : index
    %c0_85 = arith.constant 0 : index
    %141 = vector.load %arg2[%c128, %c0_85] : memref<1264x128xf32, #tpu.memory_space<vmem>>, vector<1x8xf32>
    %142 = vector.broadcast %141 : vector<1x8xf32> to vector<32x8xf32>
    %143 = arith.addf %140, %142 : vector<32x8xf32>
    %cst_86 = arith.constant 0.000000e+00 : f32
    %144 = vector.broadcast %cst_86 : f32 to vector<32x8xf32>
    %145 = arith.maximumf %143, %144 : vector<32x8xf32>
    %c31_i32_87 = arith.constant 31 : i32
    %146 = tpu.dynamic_rotate %145 by %c31_i32_87 dim 0 : vector<32x8xf32>, i32 -> vector<32x8xf32>
    %147 = arith.maximumf %145, %146 : vector<32x8xf32>
    %c1112 = arith.constant 1112 : index
    %c0_88 = arith.constant 0 : index
    %148 = vector.load %arg2[%c1112, %c0_88] : memref<1264x128xf32, #tpu.memory_space<vmem>>, vector<16x32xf32>
    %cst_89 = arith.constant dense<0.000000e+00> : vector<16x8xf32>
    %149 = tpu.matmul %148, %147, %cst_89 {dimension_numbers = #tpu.dot_dimension_numbers<[1], [0], [0], [1], [0, 0, 1, 1], [], []>} : vector<16x32xf32>, vector<32x8xf32>, vector<16x8xf32> -> vector<16x8xf32>
    %c152 = arith.constant 152 : index
    %c0_90 = arith.constant 0 : index
    %150 = vector.load %arg2[%c152, %c0_90] : memref<1264x128xf32, #tpu.memory_space<vmem>>, vector<8x16xf32>
    %cst_91 = arith.constant dense<0.000000e+00> : vector<16x16xf32>
    %151 = tpu.matmul %149, %150, %cst_91 {dimension_numbers = #tpu.dot_dimension_numbers<[1], [0], [0], [1], [0, 0, 1, 1], [], []>} : vector<16x8xf32>, vector<8x16xf32>, vector<16x16xf32> -> vector<16x16xf32>
    %c2_i32_92 = arith.constant 2 : i32
    %152 = tpu.dynamic_rotate %149 by %c2_i32_92 dim 0 : vector<16x8xf32>, i32 -> vector<16x8xf32>
    %c1128 = arith.constant 1128 : index
    %c0_93 = arith.constant 0 : index
    %153 = vector.load %arg2[%c1128, %c0_93] : memref<1264x128xf32, #tpu.memory_space<vmem>>, vector<16x1xf32>
    %154 = vector.broadcast %153 : vector<16x1xf32> to vector<16x8xf32>
    %155 = arith.mulf %152, %154 : vector<16x8xf32>
    %c136 = arith.constant 136 : index
    %c0_94 = arith.constant 0 : index
    %156 = vector.load %arg2[%c136, %c0_94] : memref<1264x128xf32, #tpu.memory_space<vmem>>, vector<8x16xf32>
    %cst_95 = arith.constant dense<0.000000e+00> : vector<16x16xf32>
    %157 = tpu.matmul %155, %156, %cst_95 {dimension_numbers = #tpu.dot_dimension_numbers<[1], [0], [0], [1], [0, 0, 1, 1], [], []>} : vector<16x8xf32>, vector<8x16xf32>, vector<16x16xf32> -> vector<16x16xf32>
    %158 = arith.addf %151, %157 : vector<16x16xf32>
    %c1_i32_96 = arith.constant 1 : i32
    %159 = tpu.dynamic_rotate %149 by %c1_i32_96 dim 0 : vector<16x8xf32>, i32 -> vector<16x8xf32>
    %c1144 = arith.constant 1144 : index
    %c0_97 = arith.constant 0 : index
    %160 = vector.load %arg2[%c1144, %c0_97] : memref<1264x128xf32, #tpu.memory_space<vmem>>, vector<16x1xf32>
    %161 = vector.broadcast %160 : vector<16x1xf32> to vector<16x8xf32>
    %162 = arith.mulf %159, %161 : vector<16x8xf32>
    %c144 = arith.constant 144 : index
    %c0_98 = arith.constant 0 : index
    %163 = vector.load %arg2[%c144, %c0_98] : memref<1264x128xf32, #tpu.memory_space<vmem>>, vector<8x16xf32>
    %cst_99 = arith.constant dense<0.000000e+00> : vector<16x16xf32>
    %164 = tpu.matmul %162, %163, %cst_99 {dimension_numbers = #tpu.dot_dimension_numbers<[1], [0], [0], [1], [0, 0, 1, 1], [], []>} : vector<16x8xf32>, vector<8x16xf32>, vector<16x16xf32> -> vector<16x16xf32>
    %165 = arith.addf %158, %164 : vector<16x16xf32>
    %c15_i32 = arith.constant 15 : i32
    %166 = tpu.dynamic_rotate %149 by %c15_i32 dim 0 : vector<16x8xf32>, i32 -> vector<16x8xf32>
    %c1176 = arith.constant 1176 : index
    %c0_100 = arith.constant 0 : index
    %167 = vector.load %arg2[%c1176, %c0_100] : memref<1264x128xf32, #tpu.memory_space<vmem>>, vector<16x1xf32>
    %168 = vector.broadcast %167 : vector<16x1xf32> to vector<16x8xf32>
    %169 = arith.mulf %166, %168 : vector<16x8xf32>
    %c160 = arith.constant 160 : index
    %c0_101 = arith.constant 0 : index
    %170 = vector.load %arg2[%c160, %c0_101] : memref<1264x128xf32, #tpu.memory_space<vmem>>, vector<8x16xf32>
    %cst_102 = arith.constant dense<0.000000e+00> : vector<16x16xf32>
    %171 = tpu.matmul %169, %170, %cst_102 {dimension_numbers = #tpu.dot_dimension_numbers<[1], [0], [0], [1], [0, 0, 1, 1], [], []>} : vector<16x8xf32>, vector<8x16xf32>, vector<16x16xf32> -> vector<16x16xf32>
    %172 = arith.addf %165, %171 : vector<16x16xf32>
    %c14_i32 = arith.constant 14 : i32
    %173 = tpu.dynamic_rotate %149 by %c14_i32 dim 0 : vector<16x8xf32>, i32 -> vector<16x8xf32>
    %c1192 = arith.constant 1192 : index
    %c0_103 = arith.constant 0 : index
    %174 = vector.load %arg2[%c1192, %c0_103] : memref<1264x128xf32, #tpu.memory_space<vmem>>, vector<16x1xf32>
    %175 = vector.broadcast %174 : vector<16x1xf32> to vector<16x8xf32>
    %176 = arith.mulf %173, %175 : vector<16x8xf32>
    %c168 = arith.constant 168 : index
    %c0_104 = arith.constant 0 : index
    %177 = vector.load %arg2[%c168, %c0_104] : memref<1264x128xf32, #tpu.memory_space<vmem>>, vector<8x16xf32>
    %cst_105 = arith.constant dense<0.000000e+00> : vector<16x16xf32>
    %178 = tpu.matmul %176, %177, %cst_105 {dimension_numbers = #tpu.dot_dimension_numbers<[1], [0], [0], [1], [0, 0, 1, 1], [], []>} : vector<16x8xf32>, vector<8x16xf32>, vector<16x16xf32> -> vector<16x16xf32>
    %179 = arith.addf %172, %178 : vector<16x16xf32>
    %c176 = arith.constant 176 : index
    %c0_106 = arith.constant 0 : index
    %180 = vector.load %arg2[%c176, %c0_106] : memref<1264x128xf32, #tpu.memory_space<vmem>>, vector<1x16xf32>
    %181 = vector.broadcast %180 : vector<1x16xf32> to vector<16x16xf32>
    %182 = arith.addf %179, %181 : vector<16x16xf32>
    %cst_107 = arith.constant 0.000000e+00 : f32
    %183 = vector.broadcast %cst_107 : f32 to vector<16x16xf32>
    %184 = arith.maximumf %182, %183 : vector<16x16xf32>
    %c216 = arith.constant 216 : index
    %c0_108 = arith.constant 0 : index
    %185 = vector.load %arg2[%c216, %c0_108] : memref<1264x128xf32, #tpu.memory_space<vmem>>, vector<16x16xf32>
    %cst_109 = arith.constant dense<0.000000e+00> : vector<16x16xf32>
    %186 = tpu.matmul %184, %185, %cst_109 {dimension_numbers = #tpu.dot_dimension_numbers<[1], [0], [0], [1], [0, 0, 1, 1], [], []>} : vector<16x16xf32>, vector<16x16xf32>, vector<16x16xf32> -> vector<16x16xf32>
    %c2_i32_110 = arith.constant 2 : i32
    %187 = tpu.dynamic_rotate %184 by %c2_i32_110 dim 0 : vector<16x16xf32>, i32 -> vector<16x16xf32>
    %c1128_111 = arith.constant 1128 : index
    %c0_112 = arith.constant 0 : index
    %188 = vector.load %arg2[%c1128_111, %c0_112] : memref<1264x128xf32, #tpu.memory_space<vmem>>, vector<16x1xf32>
    %189 = vector.broadcast %188 : vector<16x1xf32> to vector<16x16xf32>
    %190 = arith.mulf %187, %189 : vector<16x16xf32>
    %c184 = arith.constant 184 : index
    %c0_113 = arith.constant 0 : index
    %191 = vector.load %arg2[%c184, %c0_113] : memref<1264x128xf32, #tpu.memory_space<vmem>>, vector<16x16xf32>
    %cst_114 = arith.constant dense<0.000000e+00> : vector<16x16xf32>
    %192 = tpu.matmul %190, %191, %cst_114 {dimension_numbers = #tpu.dot_dimension_numbers<[1], [0], [0], [1], [0, 0, 1, 1], [], []>} : vector<16x16xf32>, vector<16x16xf32>, vector<16x16xf32> -> vector<16x16xf32>
    %193 = arith.addf %186, %192 : vector<16x16xf32>
    %c1_i32_115 = arith.constant 1 : i32
    %194 = tpu.dynamic_rotate %184 by %c1_i32_115 dim 0 : vector<16x16xf32>, i32 -> vector<16x16xf32>
    %c1144_116 = arith.constant 1144 : index
    %c0_117 = arith.constant 0 : index
    %195 = vector.load %arg2[%c1144_116, %c0_117] : memref<1264x128xf32, #tpu.memory_space<vmem>>, vector<16x1xf32>
    %196 = vector.broadcast %195 : vector<16x1xf32> to vector<16x16xf32>
    %197 = arith.mulf %194, %196 : vector<16x16xf32>
    %c200 = arith.constant 200 : index
    %c0_118 = arith.constant 0 : index
    %198 = vector.load %arg2[%c200, %c0_118] : memref<1264x128xf32, #tpu.memory_space<vmem>>, vector<16x16xf32>
    %cst_119 = arith.constant dense<0.000000e+00> : vector<16x16xf32>
    %199 = tpu.matmul %197, %198, %cst_119 {dimension_numbers = #tpu.dot_dimension_numbers<[1], [0], [0], [1], [0, 0, 1, 1], [], []>} : vector<16x16xf32>, vector<16x16xf32>, vector<16x16xf32> -> vector<16x16xf32>
    %200 = arith.addf %193, %199 : vector<16x16xf32>
    %c15_i32_120 = arith.constant 15 : i32
    %201 = tpu.dynamic_rotate %184 by %c15_i32_120 dim 0 : vector<16x16xf32>, i32 -> vector<16x16xf32>
    %c1176_121 = arith.constant 1176 : index
    %c0_122 = arith.constant 0 : index
    %202 = vector.load %arg2[%c1176_121, %c0_122] : memref<1264x128xf32, #tpu.memory_space<vmem>>, vector<16x1xf32>
    %203 = vector.broadcast %202 : vector<16x1xf32> to vector<16x16xf32>
    %204 = arith.mulf %201, %203 : vector<16x16xf32>
    %c232 = arith.constant 232 : index
    %c0_123 = arith.constant 0 : index
    %205 = vector.load %arg2[%c232, %c0_123] : memref<1264x128xf32, #tpu.memory_space<vmem>>, vector<16x16xf32>
    %cst_124 = arith.constant dense<0.000000e+00> : vector<16x16xf32>
    %206 = tpu.matmul %204, %205, %cst_124 {dimension_numbers = #tpu.dot_dimension_numbers<[1], [0], [0], [1], [0, 0, 1, 1], [], []>} : vector<16x16xf32>, vector<16x16xf32>, vector<16x16xf32> -> vector<16x16xf32>
    %207 = arith.addf %200, %206 : vector<16x16xf32>
    %c14_i32_125 = arith.constant 14 : i32
    %208 = tpu.dynamic_rotate %184 by %c14_i32_125 dim 0 : vector<16x16xf32>, i32 -> vector<16x16xf32>
    %c1192_126 = arith.constant 1192 : index
    %c0_127 = arith.constant 0 : index
    %209 = vector.load %arg2[%c1192_126, %c0_127] : memref<1264x128xf32, #tpu.memory_space<vmem>>, vector<16x1xf32>
    %210 = vector.broadcast %209 : vector<16x1xf32> to vector<16x16xf32>
    %211 = arith.mulf %208, %210 : vector<16x16xf32>
    %c248 = arith.constant 248 : index
    %c0_128 = arith.constant 0 : index
    %212 = vector.load %arg2[%c248, %c0_128] : memref<1264x128xf32, #tpu.memory_space<vmem>>, vector<16x16xf32>
    %cst_129 = arith.constant dense<0.000000e+00> : vector<16x16xf32>
    %213 = tpu.matmul %211, %212, %cst_129 {dimension_numbers = #tpu.dot_dimension_numbers<[1], [0], [0], [1], [0, 0, 1, 1], [], []>} : vector<16x16xf32>, vector<16x16xf32>, vector<16x16xf32> -> vector<16x16xf32>
    %214 = arith.addf %207, %213 : vector<16x16xf32>
    %c264 = arith.constant 264 : index
    %c0_130 = arith.constant 0 : index
    %215 = vector.load %arg2[%c264, %c0_130] : memref<1264x128xf32, #tpu.memory_space<vmem>>, vector<1x16xf32>
    %216 = vector.broadcast %215 : vector<1x16xf32> to vector<16x16xf32>
    %217 = arith.addf %214, %216 : vector<16x16xf32>
    %cst_131 = arith.constant 0.000000e+00 : f32
    %218 = vector.broadcast %cst_131 : f32 to vector<16x16xf32>
    %219 = arith.maximumf %217, %218 : vector<16x16xf32>
    %c15_i32_132 = arith.constant 15 : i32
    %220 = tpu.dynamic_rotate %219 by %c15_i32_132 dim 0 : vector<16x16xf32>, i32 -> vector<16x16xf32>
    %221 = arith.maximumf %219, %220 : vector<16x16xf32>
    %c1208 = arith.constant 1208 : index
    %c0_133 = arith.constant 0 : index
    %222 = vector.load %arg2[%c1208, %c0_133] : memref<1264x128xf32, #tpu.memory_space<vmem>>, vector<8x16xf32>
    %cst_134 = arith.constant dense<0.000000e+00> : vector<8x16xf32>
    %223 = tpu.matmul %222, %221, %cst_134 {dimension_numbers = #tpu.dot_dimension_numbers<[1], [0], [0], [1], [0, 0, 1, 1], [], []>} : vector<8x16xf32>, vector<16x16xf32>, vector<8x16xf32> -> vector<8x16xf32>
    %c304 = arith.constant 304 : index
    %c0_135 = arith.constant 0 : index
    %224 = vector.load %arg2[%c304, %c0_135] : memref<1264x128xf32, #tpu.memory_space<vmem>>, vector<16x32xf32>
    %cst_136 = arith.constant dense<0.000000e+00> : vector<8x32xf32>
    %225 = tpu.matmul %223, %224, %cst_136 {dimension_numbers = #tpu.dot_dimension_numbers<[1], [0], [0], [1], [0, 0, 1, 1], [], []>} : vector<8x16xf32>, vector<16x32xf32>, vector<8x32xf32> -> vector<8x32xf32>
    %c2_i32_137 = arith.constant 2 : i32
    %226 = tpu.dynamic_rotate %223 by %c2_i32_137 dim 0 : vector<8x16xf32>, i32 -> vector<8x16xf32>
    %c1216 = arith.constant 1216 : index
    %c0_138 = arith.constant 0 : index
    %227 = vector.load %arg2[%c1216, %c0_138] : memref<1264x128xf32, #tpu.memory_space<vmem>>, vector<8x1xf32>
    %228 = vector.broadcast %227 : vector<8x1xf32> to vector<8x16xf32>
    %229 = arith.mulf %226, %228 : vector<8x16xf32>
    %c272 = arith.constant 272 : index
    %c0_139 = arith.constant 0 : index
    %230 = vector.load %arg2[%c272, %c0_139] : memref<1264x128xf32, #tpu.memory_space<vmem>>, vector<16x32xf32>
    %cst_140 = arith.constant dense<0.000000e+00> : vector<8x32xf32>
    %231 = tpu.matmul %229, %230, %cst_140 {dimension_numbers = #tpu.dot_dimension_numbers<[1], [0], [0], [1], [0, 0, 1, 1], [], []>} : vector<8x16xf32>, vector<16x32xf32>, vector<8x32xf32> -> vector<8x32xf32>
    %232 = arith.addf %225, %231 : vector<8x32xf32>
    %c1_i32_141 = arith.constant 1 : i32
    %233 = tpu.dynamic_rotate %223 by %c1_i32_141 dim 0 : vector<8x16xf32>, i32 -> vector<8x16xf32>
    %c1224 = arith.constant 1224 : index
    %c0_142 = arith.constant 0 : index
    %234 = vector.load %arg2[%c1224, %c0_142] : memref<1264x128xf32, #tpu.memory_space<vmem>>, vector<8x1xf32>
    %235 = vector.broadcast %234 : vector<8x1xf32> to vector<8x16xf32>
    %236 = arith.mulf %233, %235 : vector<8x16xf32>
    %c288 = arith.constant 288 : index
    %c0_143 = arith.constant 0 : index
    %237 = vector.load %arg2[%c288, %c0_143] : memref<1264x128xf32, #tpu.memory_space<vmem>>, vector<16x32xf32>
    %cst_144 = arith.constant dense<0.000000e+00> : vector<8x32xf32>
    %238 = tpu.matmul %236, %237, %cst_144 {dimension_numbers = #tpu.dot_dimension_numbers<[1], [0], [0], [1], [0, 0, 1, 1], [], []>} : vector<8x16xf32>, vector<16x32xf32>, vector<8x32xf32> -> vector<8x32xf32>
    %239 = arith.addf %232, %238 : vector<8x32xf32>
    %c7_i32 = arith.constant 7 : i32
    %240 = tpu.dynamic_rotate %223 by %c7_i32 dim 0 : vector<8x16xf32>, i32 -> vector<8x16xf32>
    %c1240 = arith.constant 1240 : index
    %c0_145 = arith.constant 0 : index
    %241 = vector.load %arg2[%c1240, %c0_145] : memref<1264x128xf32, #tpu.memory_space<vmem>>, vector<8x1xf32>
    %242 = vector.broadcast %241 : vector<8x1xf32> to vector<8x16xf32>
    %243 = arith.mulf %240, %242 : vector<8x16xf32>
    %c320 = arith.constant 320 : index
    %c0_146 = arith.constant 0 : index
    %244 = vector.load %arg2[%c320, %c0_146] : memref<1264x128xf32, #tpu.memory_space<vmem>>, vector<16x32xf32>
    %cst_147 = arith.constant dense<0.000000e+00> : vector<8x32xf32>
    %245 = tpu.matmul %243, %244, %cst_147 {dimension_numbers = #tpu.dot_dimension_numbers<[1], [0], [0], [1], [0, 0, 1, 1], [], []>} : vector<8x16xf32>, vector<16x32xf32>, vector<8x32xf32> -> vector<8x32xf32>
    %246 = arith.addf %239, %245 : vector<8x32xf32>
    %c6_i32 = arith.constant 6 : i32
    %247 = tpu.dynamic_rotate %223 by %c6_i32 dim 0 : vector<8x16xf32>, i32 -> vector<8x16xf32>
    %c1248 = arith.constant 1248 : index
    %c0_148 = arith.constant 0 : index
    %248 = vector.load %arg2[%c1248, %c0_148] : memref<1264x128xf32, #tpu.memory_space<vmem>>, vector<8x1xf32>
    %249 = vector.broadcast %248 : vector<8x1xf32> to vector<8x16xf32>
    %250 = arith.mulf %247, %249 : vector<8x16xf32>
    %c336 = arith.constant 336 : index
    %c0_149 = arith.constant 0 : index
    %251 = vector.load %arg2[%c336, %c0_149] : memref<1264x128xf32, #tpu.memory_space<vmem>>, vector<16x32xf32>
    %cst_150 = arith.constant dense<0.000000e+00> : vector<8x32xf32>
    %252 = tpu.matmul %250, %251, %cst_150 {dimension_numbers = #tpu.dot_dimension_numbers<[1], [0], [0], [1], [0, 0, 1, 1], [], []>} : vector<8x16xf32>, vector<16x32xf32>, vector<8x32xf32> -> vector<8x32xf32>
    %253 = arith.addf %246, %252 : vector<8x32xf32>
    %c352 = arith.constant 352 : index
    %c0_151 = arith.constant 0 : index
    %254 = vector.load %arg2[%c352, %c0_151] : memref<1264x128xf32, #tpu.memory_space<vmem>>, vector<1x32xf32>
    %255 = vector.broadcast %254 : vector<1x32xf32> to vector<8x32xf32>
    %256 = arith.addf %253, %255 : vector<8x32xf32>
    %cst_152 = arith.constant 0.000000e+00 : f32
    %257 = vector.broadcast %cst_152 : f32 to vector<8x32xf32>
    %258 = arith.maximumf %256, %257 : vector<8x32xf32>
    %c424 = arith.constant 424 : index
    %c0_153 = arith.constant 0 : index
    %259 = vector.load %arg2[%c424, %c0_153] : memref<1264x128xf32, #tpu.memory_space<vmem>>, vector<32x32xf32>
    %cst_154 = arith.constant dense<0.000000e+00> : vector<8x32xf32>
    %260 = tpu.matmul %258, %259, %cst_154 {dimension_numbers = #tpu.dot_dimension_numbers<[1], [0], [0], [1], [0, 0, 1, 1], [], []>} : vector<8x32xf32>, vector<32x32xf32>, vector<8x32xf32> -> vector<8x32xf32>
    %c2_i32_155 = arith.constant 2 : i32
    %261 = tpu.dynamic_rotate %258 by %c2_i32_155 dim 0 : vector<8x32xf32>, i32 -> vector<8x32xf32>
    %c1216_156 = arith.constant 1216 : index
    %c0_157 = arith.constant 0 : index
    %262 = vector.load %arg2[%c1216_156, %c0_157] : memref<1264x128xf32, #tpu.memory_space<vmem>>, vector<8x1xf32>
    %263 = vector.broadcast %262 : vector<8x1xf32> to vector<8x32xf32>
    %264 = arith.mulf %261, %263 : vector<8x32xf32>
    %c360 = arith.constant 360 : index
    %c0_158 = arith.constant 0 : index
    %265 = vector.load %arg2[%c360, %c0_158] : memref<1264x128xf32, #tpu.memory_space<vmem>>, vector<32x32xf32>
    %cst_159 = arith.constant dense<0.000000e+00> : vector<8x32xf32>
    %266 = tpu.matmul %264, %265, %cst_159 {dimension_numbers = #tpu.dot_dimension_numbers<[1], [0], [0], [1], [0, 0, 1, 1], [], []>} : vector<8x32xf32>, vector<32x32xf32>, vector<8x32xf32> -> vector<8x32xf32>
    %267 = arith.addf %260, %266 : vector<8x32xf32>
    %c1_i32_160 = arith.constant 1 : i32
    %268 = tpu.dynamic_rotate %258 by %c1_i32_160 dim 0 : vector<8x32xf32>, i32 -> vector<8x32xf32>
    %c1224_161 = arith.constant 1224 : index
    %c0_162 = arith.constant 0 : index
    %269 = vector.load %arg2[%c1224_161, %c0_162] : memref<1264x128xf32, #tpu.memory_space<vmem>>, vector<8x1xf32>
    %270 = vector.broadcast %269 : vector<8x1xf32> to vector<8x32xf32>
    %271 = arith.mulf %268, %270 : vector<8x32xf32>
    %c392 = arith.constant 392 : index
    %c0_163 = arith.constant 0 : index
    %272 = vector.load %arg2[%c392, %c0_163] : memref<1264x128xf32, #tpu.memory_space<vmem>>, vector<32x32xf32>
    %cst_164 = arith.constant dense<0.000000e+00> : vector<8x32xf32>
    %273 = tpu.matmul %271, %272, %cst_164 {dimension_numbers = #tpu.dot_dimension_numbers<[1], [0], [0], [1], [0, 0, 1, 1], [], []>} : vector<8x32xf32>, vector<32x32xf32>, vector<8x32xf32> -> vector<8x32xf32>
    %274 = arith.addf %267, %273 : vector<8x32xf32>
    %c7_i32_165 = arith.constant 7 : i32
    %275 = tpu.dynamic_rotate %258 by %c7_i32_165 dim 0 : vector<8x32xf32>, i32 -> vector<8x32xf32>
    %c1240_166 = arith.constant 1240 : index
    %c0_167 = arith.constant 0 : index
    %276 = vector.load %arg2[%c1240_166, %c0_167] : memref<1264x128xf32, #tpu.memory_space<vmem>>, vector<8x1xf32>
    %277 = vector.broadcast %276 : vector<8x1xf32> to vector<8x32xf32>
    %278 = arith.mulf %275, %277 : vector<8x32xf32>
    %c456 = arith.constant 456 : index
    %c0_168 = arith.constant 0 : index
    %279 = vector.load %arg2[%c456, %c0_168] : memref<1264x128xf32, #tpu.memory_space<vmem>>, vector<32x32xf32>
    %cst_169 = arith.constant dense<0.000000e+00> : vector<8x32xf32>
    %280 = tpu.matmul %278, %279, %cst_169 {dimension_numbers = #tpu.dot_dimension_numbers<[1], [0], [0], [1], [0, 0, 1, 1], [], []>} : vector<8x32xf32>, vector<32x32xf32>, vector<8x32xf32> -> vector<8x32xf32>
    %281 = arith.addf %274, %280 : vector<8x32xf32>
    %c6_i32_170 = arith.constant 6 : i32
    %282 = tpu.dynamic_rotate %258 by %c6_i32_170 dim 0 : vector<8x32xf32>, i32 -> vector<8x32xf32>
    %c1248_171 = arith.constant 1248 : index
    %c0_172 = arith.constant 0 : index
    %283 = vector.load %arg2[%c1248_171, %c0_172] : memref<1264x128xf32, #tpu.memory_space<vmem>>, vector<8x1xf32>
    %284 = vector.broadcast %283 : vector<8x1xf32> to vector<8x32xf32>
    %285 = arith.mulf %282, %284 : vector<8x32xf32>
    %c488 = arith.constant 488 : index
    %c0_173 = arith.constant 0 : index
    %286 = vector.load %arg2[%c488, %c0_173] : memref<1264x128xf32, #tpu.memory_space<vmem>>, vector<32x32xf32>
    %cst_174 = arith.constant dense<0.000000e+00> : vector<8x32xf32>
    %287 = tpu.matmul %285, %286, %cst_174 {dimension_numbers = #tpu.dot_dimension_numbers<[1], [0], [0], [1], [0, 0, 1, 1], [], []>} : vector<8x32xf32>, vector<32x32xf32>, vector<8x32xf32> -> vector<8x32xf32>
    %288 = arith.addf %281, %287 : vector<8x32xf32>
    %c520 = arith.constant 520 : index
    %c0_175 = arith.constant 0 : index
    %289 = vector.load %arg2[%c520, %c0_175] : memref<1264x128xf32, #tpu.memory_space<vmem>>, vector<1x32xf32>
    %290 = vector.broadcast %289 : vector<1x32xf32> to vector<8x32xf32>
    %291 = arith.addf %288, %290 : vector<8x32xf32>
    %cst_176 = arith.constant 0.000000e+00 : f32
    %292 = vector.broadcast %cst_176 : f32 to vector<8x32xf32>
    %293 = arith.maximumf %291, %292 : vector<8x32xf32>
    %c7_i32_177 = arith.constant 7 : i32
    %294 = tpu.dynamic_rotate %293 by %c7_i32_177 dim 0 : vector<8x32xf32>, i32 -> vector<8x32xf32>
    %295 = arith.maximumf %293, %294 : vector<8x32xf32>
    %c1256 = arith.constant 1256 : index
    %c0_178 = arith.constant 0 : index
    %296 = vector.load %arg2[%c1256, %c0_178] : memref<1264x128xf32, #tpu.memory_space<vmem>>, vector<1x8xf32>
    %cst_179 = arith.constant dense<0.000000e+00> : vector<1x32xf32>
    %297 = tpu.matmul %296, %295, %cst_179 {dimension_numbers = #tpu.dot_dimension_numbers<[1], [0], [0], [1], [0, 0, 1, 1], [], []>} : vector<1x8xf32>, vector<8x32xf32>, vector<1x32xf32> -> vector<1x32xf32>
    %c528 = arith.constant 528 : index
    %c0_180 = arith.constant 0 : index
    %298 = vector.load %arg2[%c528, %c0_180] : memref<1264x128xf32, #tpu.memory_space<vmem>>, vector<32x20xf32>
    %cst_181 = arith.constant dense<0.000000e+00> : vector<1x20xf32>
    %299 = tpu.matmul %297, %298, %cst_181 {dimension_numbers = #tpu.dot_dimension_numbers<[1], [0], [0], [1], [0, 0, 1, 1], [], []>} : vector<1x32xf32>, vector<32x20xf32>, vector<1x20xf32> -> vector<1x20xf32>
    %c560 = arith.constant 560 : index
    %c0_182 = arith.constant 0 : index
    %300 = vector.load %arg2[%c560, %c0_182] : memref<1264x128xf32, #tpu.memory_space<vmem>>, vector<1x20xf32>
    %301 = arith.addf %299, %300 : vector<1x20xf32>
    %cst_183 = arith.constant 0.000000e+00 : f32
    %302 = vector.broadcast %cst_183 : f32 to vector<1x20xf32>
    %303 = arith.maximumf %301, %302 : vector<1x20xf32>
    %c568 = arith.constant 568 : index
    %c0_184 = arith.constant 0 : index
    %304 = vector.load %arg2[%c568, %c0_184] : memref<1264x128xf32, #tpu.memory_space<vmem>>, vector<20x5xf32>
    %cst_185 = arith.constant dense<0.000000e+00> : vector<1x5xf32>
    %305 = tpu.matmul %303, %304, %cst_185 {dimension_numbers = #tpu.dot_dimension_numbers<[1], [0], [0], [1], [0, 0, 1, 1], [], []>} : vector<1x20xf32>, vector<20x5xf32>, vector<1x5xf32> -> vector<1x5xf32>
    %c592 = arith.constant 592 : index
    %c0_186 = arith.constant 0 : index
    %306 = vector.load %arg2[%c592, %c0_186] : memref<1264x128xf32, #tpu.memory_space<vmem>>, vector<1x5xf32>
    %307 = arith.addf %305, %306 : vector<1x5xf32>
    %c0_187 = arith.constant 0 : index
    %c0_188 = arith.constant 0 : index
    %c0_189 = arith.constant 0 : index
    %308 = vector.load %arg3[%c0_187, %c0_188, %c0_189] : memref<1x1x5xf32, #tpu.memory_space<vmem>>, vector<1x1x5xf32>
    %309 = vector.shape_cast %308 : vector<1x1x5xf32> to vector<1x5xf32>
    %310 = vector.shape_cast %307 : vector<1x5xf32> to vector<1x1x5xf32>
    tpu.vector_store %arg3[%c0_187, %c0_188, %c0_189], %310 {strides = array<i32>} : memref<1x1x5xf32, #tpu.memory_space<vmem>>, vector<1x1x5xf32>,
    return
  }
  func.func @transform_0(%arg0: i32) -> (i32, i32, i32) {
    %c0_i32 = arith.constant 0 : i32
    %c0_i32_0 = arith.constant 0 : i32
    %c0_i32_1 = arith.constant 0 : i32
    return %arg0, %c0_i32, %c0_i32_0 : i32, i32, i32
  }
  func.func @transform_1(%arg0: i32) -> (i32, i32) {
    %c0_i32 = arith.constant 0 : i32
    %c0_i32_0 = arith.constant 0 : i32
    %c0_i32_1 = arith.constant 0 : i32
    return %c0_i32, %c0_i32_0 : i32, i32
  }
  func.func @transform_2(%arg0: i32) -> (i32, i32, i32) {
    %c0_i32 = arith.constant 0 : i32
    %c0_i32_0 = arith.constant 0 : i32
    %c0_i32_1 = arith.constant 0 : i32
    return %arg0, %c0_i32, %c0_i32_0 : i32, i32, i32
  }
}

</mosaic_0001>

<bundles_post_ra>
// kernel: custom_model_forward.1
= control target key start
LH: loop header
LB: loop body
LE: loop exit
PB: predicated region body
PF: predicated region fallthrough
CT: control target
= control target key end

     0   :  { %7 = vsyncpa [#allocation3], 0  ;;  %s4438_s0 = inlined_call_operand.vmem [shape: f32[2,64,2], index: 0, kind: input, shape index: {}]   ;;  %s4439_s1 = inlined_call_operand.hbm [shape: f32[1264,128], index: 1, kind: input, shape index: {}]   ;;  %s4440_s2 = inlined_call_operand.hbm [shape: f32[2,1,5], index: 2, kind: output, shape index: {}]  }
   0x1   :  { %8 = vsyncpa [#allocation4], 0 }
   0x2   :  { %10 = vsyncpa [#allocation4 + $0x1], 0  ;;  %s3426_s9 = smov 0   ;;  %s3428_s10 = smov 0  }
   0x3   :  { %s3430_s11 = smov 0   ;;  %s3432_s12 = smov 0  }
   0x4 LB: > { %s3447_s13 = sadd.s32 4294967295, %s3405_s12   ;;  %s3058_s14 = sadd.s32 4294967294, %s3405_s12   ;;  %s3405_s12 = sphi %s3432_s12, %s4446_s12   ;;  %s3401_s11 = sphi %s3430_s11, %s4445_s11   ;;  %s3397_s10 = sphi %s3428_s10, %s4444_s10   ;;  %s3393_s9 = sphi %s3426_s9, %s4443_s9  }
   0x5   : > { %s3451_s15 = sadd.s32 1, %s3405_s12   ;;  %s70_s16 = sadd.s32 1, %s3401_s11 }
   0x6   : > { %s67_s17 = ssub.s32 %s3405_s12, %s3451_s15  ;;  %p80_p0 = scmp.ne.s32.totalorder %s3401_s11, %s3397_s10 }
   0x7   : > { %p68_p1 = scmp.eq.s32.totalorder %s67_s17, 0  ;;  %p81_p2 = scmp.eq.s32.totalorder %s3447_s13, 1 }
   0x8   : > { %p86_p3 = scmp.ne.s32.totalorder %s3397_s10, %s3393_s9  ;;  %p87_p4 = scmp.eq.s32.totalorder %s3058_s14, 1 }
   0x9   : > { %s3462_s18 = scalar_select %p68_p1, %s3401_s11, %s70_s16  }
   0xa   : > { %p3464_p5 = por %p81_p2, %p80_p0  ;;  %p3468_p6 = por %p87_p4, %p86_p3 }
   0xb   : > { %p3059_p7 = scmp.ge.s32.totalorder %s3405_s12, 1  ;;  %p94_p8 = scmp.lt.s32.totalorder %s3405_s12, 3 }
   0xc   : > { %p3259_p9 = scmp.eq.s32.totalorder %s3447_s13, 0  ;;  %s105_s23 = sshll.u32 %s4439_s1, 4  ;;  %s106_s23 = int_to_ptr.hbm [resolvable:$true] %s105_s23 }
   0xd   : > { %p95_p10 = pnand %p3059_p7, %p94_p8  ;;  %s3407_s24 = smov [#allocation2]  }
   0xe   : > { %s107_s25 = sshll.u32 %s3407_s24, 4  ;;  %s3408_s26 = smov 128   ;;  %s108_s25 = int_to_ptr.vmem [resolvable:$true] %s107_s25 }
   0xf   : > { %p3251_p11 = pneg %p95_p10  ;;  %s3409_s27 = smov 8  }
  0x10   : > { %131 = sbr.rel (%p95_p10) target bundleno = 2545 (0x9f1), region = 28 }
  0x11   : > { %p3252_p12 = pnand %p3259_p9, %p3251_p11 }
  0x13   : > { %3254 = dma.hbm_to_vmem [thread:$0]  (!%p3252_p12), %s106_s23, 20224, %s108_s25, [#allocation3], %s3408_s26, %s3408_s26, %s3409_s27  }
  0x15   : > { %3384 = dma.done.wait (%p3259_p9), [#allocation3], 20224  }
  0x16   : > { %3386 = vsyncadd (%p3259_p9), [#allocation3], 4294947072  ;;  %v3410_v0 = vmov 0   ;;  %v190_v1 = vld [vmem:[#allocation2 + $0x278] sm:$0xff]  ;;  %v188_v2 = vld [vmem:[#allocation2 + $0x268] sm:$0xff]  ;;  %p153_p13 = scmp.lt.s32.totalorder %s3447_s13, 1  ;;  %v175_v48 = vlaneseq  ;;  %s2987_s8 = scalar_lea.hbm %s4440_s2, %s3447_s13 }
  0x17   : > { %3300 = vset.pattern.permute.xlu2 %v3410_v0  ;;  %3299 = vset.pattern.permute.xlu1 %v3410_v0  ;;  %v186_v3 = vld [vmem:[#allocation2 + $0x258] sm:$0xff]  ;;  %v191_v4 = vld [vmem:[#allocation2 + $0x280] sm:$0xff]  ;;  %v189_v5 = vld [vmem:[#allocation2 + $0x270] sm:$0xff]  ;;  %vm268_vm0 = vcmask 1041408   ;;  %vm243_vm1 = vcmask 15360   ;;  %vm900_vm6 = vcmask 1043456  }
  0x18   : > { %3298 = vset.pattern.permute.xlu0 %v3410_v0  ;;  %216 = vperm.xlu2 %3300, %v190_v1   ;;  %v187_v6 = vld [vmem:[#allocation2 + $0x260] sm:$0xff]  ;;  %v193_v7 = vld [vmem:[#allocation2 + $0x290] sm:$0xff]  ;;  %v398_v8 = vld [vmem:[#allocation2 + $0x298] sm:$0xff]  ;;  %s154_s28 = scalar_select %p153_p13, %s3447_s13, 1  ;;  %v3511_v51 = vshrl.u32 %v175_v48, 7  ;;  %vm875_vm7 = vcmask 31744  }
  0x19   : > { %206 = vperm.xlu1 %3299, %v188_v2   ;;  %196 = vperm.xlu0 %3298, %v186_v3   ;;  %v192_v9 = vld [vmem:[#allocation2 + $0x288] sm:$0xff]  ;;  %v549_v10 = vld [vmem:[#allocation2 + $0x320] sm:$0xff]  ;;  %v548_v12 = vld [vmem:[#allocation2 + $0x318] sm:$0xff]  ;;  %vm1362_vm8 = vcmask 523264   ;;  %vm1809_vm9 = vcmask 64512   ;;  %vm2090_vm10 = vcmask 261120  }
  0x1a   : > { %v399_v11 = vld [vmem:[#allocation2 + $0x2a0] sm:$0xff]  ;;  %v550_v13 = vld [vmem:[#allocation2 + $0x328] sm:$0xff]  ;;  %v698_v15 = vld [vmem:[#allocation2 + $0x358] sm:$0xff]  ;;  %s3244_s29 = sshll.u32 %s154_s28, 6  ;;  %vm177_vm2 = vcmp.lt.s32.totalorder %v3511_v51, 2  ;;  %vm689_vm3 = vcmp.lt.s32.totalorder %v3511_v51, 6 }
  0x1b   : > { %v400_v14 = vld [vmem:[#allocation2 + $0x2a8] sm:$0xff]  ;;  %v551_v16 = vld [vmem:[#allocation2 + $0x330] sm:$0xff]  ;;  %v699_v18 = vld [vmem:[#allocation2 + $0x360] sm:$0xff]  ;;  %s3489_s4 = scalar_lea.vmem %s4438_s0, %s3244_s29  ;;  %vm389_vm4 = vcmp.lt.s32.totalorder %v3511_v51, 1  ;;  %vm539_vm5 = vcmp.lt.s32.totalorder %v3511_v51, 7  ;;  %vm2364_vm11 = vcmask 130048  }
  0x1c   : > { %v401_v17 = vld [vmem:[#allocation2 + $0x2b0] sm:$0xff]  ;;  %v552_v19 = vld [vmem:[#allocation2 + $0x338] sm:$0xff]  ;;  %v700_v21 = vld [vmem:[#allocation2 + $0x368] sm:$0xff]  ;;  %vm2949_vm12 = vcmask 162816   ;;  %s151_s5 = sand.u32 1, %s3397_s10   ;;  %s2991_s17 = sshll.u32 %s2987_s8, 4  ;;  %s2992_s17 = int_to_ptr.hbm [resolvable:$true] %s2991_s17 }
  0x1d   : > { %v402_v20 = vld [vmem:[#allocation2 + $0x2b8] sm:$0xff]  ;;  %v553_v22 = vld [vmem:[#allocation2 + $0x340] sm:$0xff]  ;;  %v701_v24 = vld [vmem:[#allocation2 + $0x370] sm:$0xff]  ;;  %s152_s14 = scalar_lea.vmem [#allocation5], %s151_s5  ;;  %vm2976_vm13 = vcmask 32768   ;;  %s2979_s21 = scalar_lea.sflag [#allocation4], %s151_s5 }
  0x1e   : > { %v403_v23 = vld [vmem:[#allocation2 + $0x2c0] sm:$0xff]  ;;  %v554_v25 = vld [vmem:[#allocation2 + $0x348] sm:$0xff]  ;;  %v702_v27 = vld [vmem:[#allocation2 + $0x378] sm:$0xff]  ;;  %s2989_s16 = sshll.u32 %s152_s14, 4  ;;  %s3353_s22 = sshra.s32 %s2992_s17, 4  ;;  %s2990_s16 = int_to_ptr.vmem [resolvable:$true] %s2989_s16  ;;  %s3354_s22 = int_to_ptr.hbm [resolvable:$true] %s3353_s22 }
  0x1f   : > { %v404_v26 = vld [vmem:[#allocation2 + $0x2c8] sm:$0xff]  ;;  %v555_v28 = vld [vmem:[#allocation2 + $0x350] sm:$0xff]  ;;  %v703_v30 = vld [vmem:[#allocation2 + $0x380] sm:$0xff]  ;;  %s3355_s23 = scalar_lea.hbm %s3354_s22, 1  ;;  %s3359_s25 = scalar_lea.hbm %s4440_s2, 2 }
  0x20   : > { %221 = vperm.xlu2 %3300, %v191_v4   ;;  %v405_v29 = vld [vmem:[#allocation2 + $0x2d0] sm:$0xff]  ;;  %v1413_v31 = vld [vmem:[#allocation2 + $0x3b8] sm:$0xff]  ;;  %v704_v33 = vld [vmem:[#allocation2 + $0x388] sm:$0xff]  ;;  %p3356_p0 = scmp.ne.s32.totalorder %s3354_s22, %s3355_s23  ;;  %p3360_p3 = scmp.lt.s32.totalorder %s3354_s22, %s4440_s2 }
  0x21   : > { %211 = vperm.xlu1 %3299, %v189_v5   ;;  %201 = vperm.xlu0 %3298, %v187_v6   ;;  %v705_v32 = vld [vmem:[#allocation2 + $0x390] sm:$0xff]  ;;  %v242_v34 = vld [vmem:[#allocation2] sm:$0x3]  ;;  %v166_v35 = vld [vmem:[#allocation2 + $0x4] sm:$0x3]  ;;  %p3361_p4 = scmp.lt.s32.totalorder %s3359_s25, %s3355_s23 }
  0x22   : > { %v1416_v36 = vld [vmem:[#allocation2 + $0x3d0] sm:$0xff]  ;;  %v1415_v37 = vld [vmem:[#allocation2 + $0x3c8] sm:$0xff]  ;;  %v3492_v38 = vld [vmem:[%s3489_s4] sm:$0xff]  ;;  %3066 = vmatpush.msk.msra.mxu0 %vm268_vm0, %v242_v34  ;;  %3075 = vmatpush.msk.msra.mxu1 %vm268_vm0, %v166_v35  ;;  %p3357_p1 = pnand %p3356_p0, %p3464_p5 }
  0x23   : > { %v1414_v39 = vld [vmem:[#allocation2 + $0x3c0] sm:$0xff]  ;;  %3076 = vmatmul.msk.f32.vlgmr.msra.gmra.mxu1 %vm243_vm1, %v3492_v38  ;;  %v1623_v40 = vld [vmem:[#allocation2 + $0x418] sm:$0xff]  ;;  %v3499_v42 = vld [vmem:[%s3489_s4 + $0x8] sm:$0xff]  ;;  %v167_v58 = vrot.slane %v3492_v38, 6  ;;  %v681_v62 = vrot.slane %v3492_v38, 2  ;;  %p3362_p7 = por %p3361_p4, %p3360_p3 }
  0x24   : > { %v1539_v41 = vld [vmem:[#allocation2 + $0x3e0] sm:$0xff]  ;;  %v1538_v43 = vld [vmem:[#allocation2 + $0x3d8] sm:$0xff]  ;;  %v1540_v46 = vld [vmem:[#allocation2 + $0x3e8] sm:$0xff]  ;;  %v682_v63 = vrot.slane %v3499_v42, 2  ;;  %v168_v5 = vrot.slane %v3499_v42, 6  ;;  %p3358_p2 = pneg %p3357_p1 }
  0x25   : > { %v454_v44 = vld [vmem:[#allocation2 + $0x2] sm:$0x3]  ;;  %v3504_v47 = vld [vmem:[%s3489_s4 + $0x10] sm:$0xff]  ;;  %v1708_v49 = vld [vmem:[#allocation2 + $0x438] sm:$0xff] }
  0x26   : > { %v1624_v45 = vld [vmem:[#allocation2 + $0x420] sm:$0xff]  ;;  %3084 = vmatpush.msk.msra.mxu2 %vm268_vm0, %v454_v44  ;;  %v3514_v52 = vld [vmem:[%s3489_s4 + $0x38] sm:$0xff]  ;;  %v1625_v56 = vld [vmem:[#allocation2 + $0x428] sm:$0xff]  ;;  %v3543_v3 = vsel %vm689_vm3, %v681_v62, %v682_v63  ;;  %p3363_p8 = pnand %p3362_p7, %p3358_p2 }
  0x27   : > { %v604_v53 = vld [vmem:[#allocation2 + $0x6] sm:$0x3]  ;;  %v3517_v54 = vld [vmem:[%s3489_s4 + $0x18] sm:$0xff]  ;;  %v174_v55 = vrot.slane %v3514_v52, 6  ;;  %v1541_v57 = vld [vmem:[#allocation2 + $0x3f0] sm:$0xff] }
  0x28   : > { %231 = vperm.xlu2 %3300, %v193_v7   ;;  %3093 = vmatpush.msk.msra.mxu3 %vm268_vm0, %v604_v53  ;;  %v1709_v59 = vld [vmem:[#allocation2 + $0x440] sm:$0xff]  ;;  %v1711_v6 = vld [vmem:[#allocation2 + $0x450] sm:$0xff]  ;;  %v2202_v35 = vld [vmem:[#allocation2 + $0x478] sm:$0xff] }
  0x29   : > { %408 = vperm.xlu1 %3299, %v398_v8   ;;  %226 = vperm.xlu0 %3298, %v192_v9   ;;  %v185_v61 = vsel %vm177_vm2, %v174_v55, %v167_v58  ;;  %v3546_v4 = vld [vmem:[%s3489_s4 + $0x20] sm:$0xff]  ;;  %v1626_v7 = vld [vmem:[#allocation2 + $0x430] sm:$0xff]  ;;  %v1710_v8 = vld [vmem:[#allocation2 + $0x448] sm:$0xff]  ;;  %v184_v9 = vsel %vm177_vm2, %v167_v58, %v168_v5 }
  0x2a   : > { %v2253_v34 = vld [vmem:[#allocation2 + $0x4a0] sm:$0xff]  ;;  %v171_v44 = vrot.slane %v3546_v4, 6  ;;  %v2710_v51 = vld [vmem:[#allocation2 + $0x150] sm:$0xff] }
  0x2b   : > { %3077 = vmatmul.msk.f32.gmra.mxu1 %vm243_vm1, %v3499_v42  ;;  %v2203_v58 = vld [vmem:[#allocation2 + $0x480] sm:$0xff] }
  0x30   : > { %563 = vperm.xlu2 %3300, %v549_v10   ;;  %v683_v10 = vrot.slane %v3504_v47, 2 }
  0x31   : > { %413 = vperm.xlu1 %3299, %v399_v11   ;;  %558 = vperm.xlu0 %3298, %v548_v12  }
  0x33   : > { %3078 = vmatmul.msk.f32.gmra.mxu1 %vm243_vm1, %v3504_v47 }
  0x38   : > { %568 = vperm.xlu2 %3300, %v550_v13   ;;  %v169_v13 = vrot.slane %v3504_v47, 6 }
  0x39   : > { %418 = vperm.xlu1 %3299, %v400_v14   ;;  %708 = vperm.xlu0 %3298, %v698_v15  }
  0x3b   : > { %3079 = vmatmul.msk.f32.gmra.mxu1 %vm243_vm1, %v3517_v54 }
  0x40   : > { %573 = vperm.xlu2 %3300, %v551_v16   ;;  %v381_v16 = vrot.slane %v3492_v38, 7 }
  0x41   : > { %423 = vperm.xlu1 %3299, %v401_v17   ;;  %713 = vperm.xlu0 %3298, %v699_v18   ;;  %v388_v17 = vrot.slane %v3514_v52, 7  ;;  %v3569_v18 = vsel %vm689_vm3, %v682_v63, %v683_v10 }
  0x43   : > { %3080 = vmatmul.msk.f32.gmra.mxu1 %vm243_vm1, %v3546_v4 }
  0x48   : > { %578 = vperm.xlu2 %3300, %v552_v19   ;;  %v3572_v19 = vld [vmem:[%s3489_s4 + $0x28] sm:$0xff] }
  0x49   : > { %428 = vperm.xlu1 %3299, %v402_v20   ;;  %718 = vperm.xlu0 %3298, %v700_v21   ;;  %v2252_v20 = vld [vmem:[#allocation2 + $0x498] sm:$0xff]  ;;  %v2126_v21 = vld [vmem:[#allocation2 + $0x470] sm:$0xff] }
  0x4b   : > { %3081 = vmatmul.msk.f32.gmra.mxu1 %vm243_vm1, %v3572_v19 }
  0x50   : > { %583 = vperm.xlu2 %3300, %v553_v22   ;;  %v2125_v22 = vld [vmem:[#allocation2 + $0x468] sm:$0xff] }
  0x51   : > { %433 = vperm.xlu1 %3299, %v403_v23   ;;  %723 = vperm.xlu0 %3298, %v701_v24   ;;  %v183_v23 = vsel %vm177_vm2, %v168_v5, %v169_v13  ;;  %v397_v24 = vsel %vm389_vm4, %v388_v17, %v381_v16 }
  0x58   : > { %588 = vperm.xlu2 %3300, %v554_v25  }
  0x59   : > { %438 = vperm.xlu1 %3299, %v404_v26   ;;  %728 = vperm.xlu0 %3298, %v702_v27  }
  0x60   : > { %593 = vperm.xlu2 %3300, %v555_v28  }
  0x61   : > { %443 = vperm.xlu1 %3299, %v405_v29   ;;  %733 = vperm.xlu0 %3298, %v703_v30   ;;  %v382_v29 = vrot.slane %v3499_v42, 7  ;;  %v170_v30 = vrot.slane %v3517_v54, 6 }
  0x68   : > { %1419 = vperm.xlu2 %3300, %v1413_v31   ;;  %v3593_v31 = vld [vmem:[%s3489_s4 + $0x30] sm:$0xff] }
  0x69   : > { %743 = vperm.xlu1 %3299, %v705_v32   ;;  %738 = vperm.xlu0 %3298, %v704_v33   ;;  %v532_v33 = vrot.slane %v3499_v42, 1 }
  0x6a   : > { %3082 = vmatmul.msk.f32.gmra.mxu1 %vm243_vm1, %v3593_v31 }
  0x70   : > { %1434 = vperm.xlu2 %3300, %v1416_v36   ;;  %v531_v36 = vrot.slane %v3492_v38, 1 }
  0x71   : > { %1429 = vperm.xlu1 %3299, %v1415_v37   ;;  %1424 = vperm.xlu0 %3298, %v1414_v39   ;;  %v2302_v37 = vld [vmem:[#allocation2 + $0x4a8] sm:$0xff] }
  0x72   : > { %v3509_v50 = vpop.permute.xlu2 %216  ;;  %v754_v39 = vld [vmem:[#allocation2 + $0x8] sm:$0x3]  ;;  %v546_v42 = vsel %vm539_vm5, %v531_v36, %v532_v33  ;;  %3083 = vmatmul.msk.f32.gmra.mxu1 %vm243_vm1, %v3514_v52 }
  0x73   : > { %3102 = vmatpush.msk.msrb.mxu0 %vm268_vm0, %v754_v39  ;;  %v535_v39 = vrot.slane %v3546_v4, 1 }
  0x78   : > { %1629 = vperm.xlu2 %3300, %v1623_v40   ;;  %v396_v40 = vsel %vm389_vm4, %v381_v16, %v382_v29  ;;  %v2635_v16 = vld [vmem:[#allocation2 + $0x4c8] sm:$0xff] }
  0x79   : > { %1549 = vperm.xlu1 %3299, %v1539_v41   ;;  %1544 = vperm.xlu0 %3298, %v1538_v43   ;;  %v182_v41 = vsel %vm177_vm2, %v169_v13, %v170_v30  ;;  %v384_v13 = vrot.slane %v3517_v54, 7 }
  0x7a   : > { %v3525_v60 = vpop.permute.xlu2 %221 }
  0x80   : > { %1634 = vperm.xlu2 %3300, %v1624_v45   ;;  %v533_v45 = vrot.slane %v3504_v47, 1 }
  0x81   : > { %1554 = vperm.xlu1 %3299, %v1540_v46   ;;  %1714 = vperm.xlu0 %3298, %v1708_v49  }
  0x82   : > { %v3557_v12 = vpop.permute.xlu2 %231  ;;  %v545_v63 = vsel %vm539_vm5, %v532_v33, %v533_v45 }
  0x88   : > { %1639 = vperm.xlu2 %3300, %v1625_v56   ;;  %v383_v56 = vrot.slane %v3504_v47, 7 }
  0x89   : > { %1559 = vperm.xlu1 %3299, %v1541_v57   ;;  %1719 = vperm.xlu0 %3298, %v1709_v59   ;;  %v2579_v57 = vld [vmem:[#allocation2 + $0x4c0] sm:$0xff]  ;;  %v2303_v59 = vld [vmem:[#allocation2 + $0x4b0] sm:$0xff] }
  0x8a   : > { %v3595_v32 = vpop.permute.xlu2 %563  ;;  %v395_v5 = vsel %vm389_vm4, %v382_v29, %v383_v56 }
  0x8b   : > { %v3533_v0 = vpop.permute.xlu1 %206  ;;  %v3536_v1 = vpop.permute.xlu0 %196 }
  0x8c   : > { %v234_v2 = vmul.f32 %v3536_v1, %v185_v61  ;;  %v236_v25 = vmul.f32 %v3533_v0, %v183_v23  ;;  %v181_v61 = vsel %vm177_vm2, %v170_v30, %v171_v44  ;;  %v394_v23 = vsel %vm389_vm4, %v383_v56, %v384_v13 }
  0x8d   : > { %v386_v56 = vrot.slane %v3572_v19, 7 }
  0x8e   : > { %3067 = vmatmul.msk.f32.vlgmr.msra.gmra.mxu0 %vm243_vm1, %v234_v2 }
  0x90   : > { %1729 = vperm.xlu2 %3300, %v1711_v6   ;;  %v238_v6 = vmul.f32 %v3509_v50, %v181_v61 }
  0x91   : > { %1644 = vperm.xlu1 %3299, %v1626_v7   ;;  %1724 = vperm.xlu0 %3298, %v1710_v8   ;;  %v597_v7 = vmul.f32 %v3595_v32, %v545_v63 }
  0x92   : > { %v3630_v2 = vpop.permute.xlu2 %568 }
  0x93   : > { %v3555_v11 = vpop.permute.xlu1 %211  ;;  %v3560_v14 = vpop.permute.xlu0 %201 }
  0x94   : > { %v235_v15 = vmul.f32 %v3560_v14, %v184_v9  ;;  %v237_v49 = vmul.f32 %v3555_v11, %v182_v41 }
  0x96   : > { %3068 = vmatmul.msk.f32.gmra.mxu0 %vm243_vm1, %v235_v15  ;;  %v534_v15 = vrot.slane %v3517_v54, 1 }
  0x98   : > { %2256 = vperm.xlu2 %3300, %v2252_v20   ;;  %v2703_v20 = vld [vmem:[#allocation2 + $0x4e0] sm:$0xff]  ;;  %v543_v41 = vsel %vm539_vm5, %v534_v15, %v535_v39 }
  0x99   : > { %2134 = vperm.xlu1 %3299, %v2126_v21   ;;  %2129 = vperm.xlu0 %3298, %v2125_v22   ;;  %v2669_v21 = vld [vmem:[#allocation2 + $0x4d8] sm:$0xff]  ;;  %v172_v22 = vrot.slane %v3572_v19, 6 }
  0x9b   : > { %v3585_v26 = vpop.permute.xlu1 %408  ;;  %v3588_v28 = vpop.permute.xlu0 %226 }
  0x9c   : > { %v446_v27 = vmul.f32 %v3585_v26, %v397_v24  ;;  %v180_v24 = vsel %vm177_vm2, %v171_v44, %v172_v22 }
  0x9d   : > { %v239_v33 = vmul.f32 %v3525_v60, %v180_v24 }
  0x9e   : > { %3085 = vmatmul.msk.f32.vlgmr.msra.gmra.mxu2 %vm243_vm1, %v446_v27  ;;  %3069 = vmatmul.msk.f32.gmra.mxu0 %vm243_vm1, %v236_v25  ;;  %v544_v25 = vsel %vm539_vm5, %v533_v45, %v534_v15  ;;  %v3653_v27 = vpop.permute.xlu2 %573 }
  0xa0   : > { %2261 = vperm.xlu2 %3300, %v2253_v34   ;;  %v598_v34 = vmul.f32 %v3630_v2, %v544_v25  ;;  %v357_v38 = vpop.f32.mrf.mxu1 }
  0xa1   : > { %2206 = vperm.xlu1 %3299, %v2202_v35   ;;  %2306 = vperm.xlu0 %3298, %v2302_v37   ;;  %v385_v35 = vrot.slane %v3546_v4, 7  ;;  %v173_v37 = vrot.slane %v3593_v31, 6 }
  0xa3   : > { %v3613_v43 = vpop.permute.xlu1 %413  ;;  %v3618_v48 = vpop.permute.xlu0 %558  ;;  %v178_v61 = vsel %vm177_vm2, %v173_v37, %v174_v55 }
  0xa4   : > { %v447_v46 = vmul.f32 %v3613_v43, %v396_v40  ;;  %v596_v53 = vmul.f32 %v3618_v48, %v546_v42  ;;  %v393_v40 = vsel %vm389_vm4, %v384_v13, %v385_v35  ;;  %v179_v42 = vsel %vm177_vm2, %v172_v22, %v173_v37 }
  0xa5   : > { %v387_v13 = vrot.slane %v3593_v31, 7 }
  0xa6   : > { %3086 = vmatmul.msk.f32.gmra.mxu2 %vm243_vm1, %v447_v46  ;;  %3070 = vmatmul.msk.f32.gmra.mxu0 %vm243_vm1, %v237_v49  ;;  %v3674_v45 = vpop.permute.xlu2 %578  ;;  %v599_v49 = vmul.f32 %v3653_v27, %v543_v41 }
  0xa7   : > { %3094 = vmatmul.msk.f32.vlgmr.msra.gmra.mxu3 %vm243_vm1, %v596_v53  ;;  %v240_v53 = vmul.f32 %v3588_v28, %v179_v42  ;;  %v684_v42 = vrot.slane %v3517_v54, 2 }
  0xa8   : > { %2582 = vperm.xlu2 %3300, %v2579_v57   ;;  %v536_v57 = vrot.slane %v3572_v19, 1 }
  0xa9   : > { %2211 = vperm.xlu1 %3299, %v2203_v58   ;;  %2311 = vperm.xlu0 %3298, %v2303_v59   ;;  %v392_v59 = vsel %vm389_vm4, %v385_v35, %v386_v56 }
  0xaa   : > { %v542_v63 = vsel %vm539_vm5, %v535_v39, %v536_v57 }
  0xab   : > { %v3638_v8 = vpop.permute.xlu1 %418  ;;  %v3681_v58 = vpop.permute.xlu0 %708 }
  0xac   : > { %v448_v9 = vmul.f32 %v3638_v8, %v395_v5  ;;  %v746_v25 = vmul.f32 %v3681_v58, %v3543_v3 }
  0xae   : > { %3087 = vmatmul.msk.f32.gmra.mxu2 %vm243_vm1, %v448_v9  ;;  %3071 = vmatmul.msk.f32.gmra.mxu0 %vm243_vm1, %v238_v6  ;;  %v600_v9 = vmul.f32 %v3674_v45, %v542_v63  ;;  %v3700_v15 = vpop.permute.xlu2 %583 }
  0xaf   : > { %3095 = vmatmul.msk.f32.gmra.mxu3 %vm243_vm1, %v597_v7  ;;  %v241_v7 = vmul.f32 %v3557_v12, %v178_v61  ;;  %v687_v61 = vrot.slane %v3593_v31, 2 }
  0xb0   : > { %2638 = vperm.xlu2 %3300, %v2635_v16   ;;  %v537_v16 = vrot.slane %v3593_v31, 1 }
  0xb1   : > { %2706 = vperm.xlu1 %3299, %v2703_v20   ;;  %2672 = vperm.xlu0 %3298, %v2669_v21   ;;  %v391_v20 = vsel %vm389_vm4, %v386_v56, %v387_v13  ;;  %v685_v56 = vrot.slane %v3546_v4, 2 }
  0xb2   : > { %v541_v21 = vsel %vm539_vm5, %v536_v57, %v537_v16 }
  0xb3   : > { %v3655_v29 = vpop.permute.xlu1 %423  ;;  %v3706_v55 = vpop.permute.xlu0 %713  ;;  %v601_v24 = vmul.f32 %v3700_v15, %v541_v21 }
  0xb4   : > { %v449_v30 = vmul.f32 %v3655_v29, %v394_v23  ;;  %v747_v41 = vmul.f32 %v3706_v55, %v3569_v18  ;;  %v694_v18 = vsel %vm689_vm3, %v683_v10, %v684_v42  ;;  %v686_v10 = vrot.slane %v3572_v19, 2 }
  0xb5   : > { %v688_v19 = vrot.slane %v3514_v52, 2 }
  0xb6   : > { %3088 = vmatmul.msk.f32.gmra.mxu2 %vm243_vm1, %v449_v30  ;;  %3072 = vmatmul.msk.f32.gmra.mxu0 %vm243_vm1, %v239_v33  ;;  %v538_v30 = vrot.slane %v3514_v52, 1  ;;  %v3722_v33 = vpop.permute.xlu2 %588 }
  0xb7   : > { %3096 = vmatmul.msk.f32.gmra.mxu3 %vm243_vm1, %v598_v34  ;;  %v390_v34 = vsel %vm389_vm4, %v387_v13, %v388_v17  ;;  %v690_v13 = vsel %vm689_vm3, %v687_v61, %v688_v19 }
  0xb8   : > { %v540_v35 = vsel %vm539_vm5, %v537_v16, %v538_v30 }
  0xbb   : > { %v3672_v44 = vpop.permute.xlu1 %428  ;;  %v3730_v37 = vpop.permute.xlu0 %718 }
  0xbc   : > { %v450_v46 = vmul.f32 %v3672_v44, %v393_v40  ;;  %v602_v40 = vmul.f32 %v3722_v33, %v540_v35 }
  0xbe   : > { %3089 = vmatmul.msk.f32.gmra.mxu2 %vm243_vm1, %v450_v46  ;;  %3073 = vmatmul.msk.f32.gmra.mxu0 %vm243_vm1, %v240_v53  ;;  %v3742_v17 = vpop.permute.xlu2 %593  ;;  %v547_v46 = vsel %vm539_vm5, %v538_v30, %v531_v36  ;;  %v748_v53 = vmul.f32 %v3730_v37, %v694_v18  ;;  %v693_v36 = vsel %vm689_vm3, %v684_v42, %v685_v56  ;;  %v360_v42 = vpop.f32.mrf.mxu1 }
  0xbf   : > { %3097 = vmatmul.msk.f32.gmra.mxu3 %vm243_vm1, %v599_v49  ;;  %v603_v54 = vmul.f32 %v3742_v17, %v547_v46 }
  0xc3   : > { %v3694_v5 = vpop.permute.xlu1 %433  ;;  %v3752_v49 = vpop.permute.xlu0 %723 }
  0xc4   : > { %v451_v6 = vmul.f32 %v3694_v5, %v392_v59  ;;  %v749_v47 = vmul.f32 %v3752_v49, %v693_v36  ;;  %v692_v59 = vsel %vm689_vm3, %v685_v56, %v686_v10 }
  0xc6   : > { %3090 = vmatmul.msk.f32.gmra.mxu2 %vm243_vm1, %v451_v6  ;;  %3074 = vmatmul.msk.f32.gmra.mxu0 %vm243_vm1, %v241_v7  ;;  %v691_v6 = vsel %vm689_vm3, %v686_v10, %v687_v61  ;;  %v363_v36 = vpop.f32.mrf.mxu1  ;;  %v3802_v10 = vld [vmem:[#allocation2 + $0x10] ss:$0 sm:$0xff] }
  0xc7   : > { %3098 = vmatmul.msk.f32.gmra.mxu3 %vm243_vm1, %v600_v9 }
  0xcb   : > { %v3712_v22 = vpop.permute.xlu1 %438  ;;  %v3762_v57 = vpop.permute.xlu0 %728 }
  0xcc   : > { %v452_v23 = vmul.f32 %v3712_v22, %v391_v20  ;;  %v750_v4 = vmul.f32 %v3762_v57, %v692_v59  ;;  %v697_v20 = vsel %vm689_vm3, %v688_v19, %v681_v62 }
  0xce   : > { %3091 = vmatmul.msk.f32.gmra.mxu2 %vm243_vm1, %v452_v23  ;;  %3103 = vmatmul.msk.f32.vlgmr.msrb.gmra.mxu0 %vm243_vm1, %v746_v25 }
  0xcf   : > { %3099 = vmatmul.msk.f32.gmra.mxu3 %vm243_vm1, %v601_v24 }
  0xd3   : > { %v3732_v3 = vpop.permute.xlu1 %443  ;;  %v3771_v63 = vpop.permute.xlu0 %733 }
  0xd4   : > { %v453_v39 = vmul.f32 %v3732_v3, %v390_v34  ;;  %v751_v7 = vmul.f32 %v3771_v63, %v691_v6  ;;  %v849_v34 = vld [vmem:[#allocation2 + $0x20] sm:$0xf] }
  0xd5   : > { %3120 = vmatpush.msk.msrb.mxu2 %vm900_vm6, %v849_v34 }
  0xd6   : > { %3092 = vmatmul.msk.f32.gmra.mxu2 %vm243_vm1, %v453_v39  ;;  %3104 = vmatmul.msk.f32.gmra.mxu0 %vm243_vm1, %v747_v41  ;;  %v1138_v41 = vld [vmem:[#allocation2 + $0x24] sm:$0xf] }
  0xd7   : > { %3100 = vmatmul.msk.f32.gmra.mxu3 %vm243_vm1, %v602_v40  ;;  %3138 = vmatpush.msk.msra.mxu0 %vm900_vm6, %v1138_v41 }
  0xdb   : > { %v3778_v9 = vpop.permute.xlu0 %738  ;;  %v3784_v16 = vpop.permute.xlu1 %743 }
  0xdc   : > { %v752_v31 = vmul.f32 %v3778_v9, %v690_v13  ;;  %v753_v52 = vmul.f32 %v3784_v16, %v697_v20 }
  0xde   : > { %3105 = vmatmul.msk.f32.gmra.mxu0 %vm243_vm1, %v748_v53 }
  0xdf   : > { %3101 = vmatmul.msk.f32.gmra.mxu3 %vm243_vm1, %v603_v54 }
  0xe6   : > { %3106 = vmatmul.msk.f32.gmra.mxu0 %vm243_vm1, %v749_v47 }
  0xee   : > { %3107 = vmatmul.msk.f32.gmra.mxu0 %vm243_vm1, %v750_v4 }
  0xf6   : > { %3108 = vmatmul.msk.f32.gmra.mxu0 %vm243_vm1, %v751_v7 }
  0xfe   : > { %3109 = vmatmul.msk.f32.gmra.mxu0 %vm243_vm1, %v752_v31 }
 0x106   : > { %3110 = vmatmul.msk.f32.gmra.mxu0 %vm243_vm1, %v753_v52  ;;  %v366_v52 = vpop.f32.mrf.mxu1 }
 0x10b   : > { %v289_v21 = vpop.f32.mrf.mxu0 }
 0x10c   : > { %v358_v53 = vadd.f32 %v357_v38, %v289_v21 }
 0x113   : > { %v292_v23 = vpop.f32.mrf.mxu0 }
 0x114   : > { %v361_v7 = vadd.f32 %v360_v42, %v292_v23 }
 0x11b   : > { %v295_v24 = vpop.f32.mrf.mxu0 }
 0x11c   : > { %v364_v38 = vadd.f32 %v363_v36, %v295_v24 }
 0x121   : > { %v499_v39 = vpop.f32.mrf.mxu2 }
 0x122   : > { %v523_v56 = vadd.f32 %v499_v39, %v358_v53 }
 0x123   : > { %v298_v25 = vpop.f32.mrf.mxu0 }
 0x129   : > { %v502_v46 = vpop.f32.mrf.mxu2 }
 0x12a   : > { %v649_v40 = vpop.f32.mrf.mxu3  ;;  %v524_v13 = vadd.f32 %v502_v46, %v361_v7  ;;  %v367_v7 = vadd.f32 %v366_v52, %v298_v25 }
 0x12b   : > { %v3792_v30 = vpop.f32.mrf.mxu0  ;;  %v673_v47 = vadd.f32 %v649_v40, %v523_v56 }
 0x131   : > { %v505_v59 = vpop.f32.mrf.mxu2 }
 0x132   : > { %v652_v18 = vpop.f32.mrf.mxu3  ;;  %v525_v41 = vadd.f32 %v505_v59, %v364_v38 }
 0x133   : > { %v3795_v35 = vpop.f32.mrf.mxu0  ;;  %v674_v20 = vadd.f32 %v652_v18, %v524_v13 }
 0x139   : > { %v508_v39 = vpop.f32.mrf.mxu2 }
 0x13a   : > { %v655_v6 = vpop.f32.mrf.mxu3 }
 0x13b   : > { %v3797_v62 = vpop.f32.mrf.mxu0  ;;  %v675_v42 = vadd.f32 %v655_v6, %v525_v41 }
 0x141   : > { %v511_v13 = vpop.f32.mrf.mxu2 }
 0x142   : > { %v658_v53 = vpop.f32.mrf.mxu3 }
 0x143   : > { %v3800_v54 = vpop.f32.mrf.mxu0 }
 0x14a   : > { %v661_v38 = vpop.f32.mrf.mxu3 }
 0x14b   : > { %v799_v4 = vpop.f32.mrf.mxu0 }
 0x14c   : > { %v823_v61 = vadd.f32 %v799_v4, %v673_v47 }
 0x14e   : > { %v833_v19 = vadd.f32 %v3802_v10, %v823_v61  ;;  %v369_v61 = vpop.f32.mrf.mxu1 }
 0x150   : > { %v3805_v31 = vmax.f32 %v833_v19, 0.0 }
 0x152   : > { %3121 = vmatmul.msk.f32.vlgmr.msrb.gmra.mxu2 %vm875_vm7, %v3805_v31  ;;  %v1114_v46 = vrot.slane %v3805_v31, 1  ;;  %v1215_v56 = vrot.slane %v3805_v31, 2 }
 0x153   : > { %v802_v21 = vpop.f32.mrf.mxu0 }
 0x154   : > { %v824_v34 = vadd.f32 %v802_v21, %v674_v20  ;;  %v526_v20 = vadd.f32 %v508_v39, %v367_v7 }
 0x156   : > { %v834_v40 = vadd.f32 %v3802_v10, %v824_v34  ;;  %v874_v34 = vld [vmem:[#allocation2 + $0x18] sm:$0xf] }
 0x157   : > { %3111 = vmatpush.msk.msrb.mxu1 %vm900_vm6, %v874_v34  ;;  %v664_v34 = vpop.f32.mrf.mxu3 }
 0x158   : > { %v3810_v23 = vmax.f32 %v834_v40, 0.0  ;;  %v676_v40 = vadd.f32 %v658_v53, %v526_v20  ;;  %v370_v53 = vadd.f32 %v369_v61, %v3792_v30 }
 0x15a   : > { %v1115_v18 = vrot.slane %v3810_v23, 1  ;;  %v1216_v47 = vrot.slane %v3810_v23, 2  ;;  %3122 = vmatmul.msk.f32.gmra.mxu2 %vm875_vm7, %v3810_v23 }
 0x15b   : > { %v805_v24 = vpop.f32.mrf.mxu0 }
 0x15c   : > { %v825_v36 = vadd.f32 %v805_v24, %v675_v42  ;;  %v1128_v59 = vsel %vm539_vm5, %v1114_v46, %v1115_v18  ;;  %v3826_v4 = vsel %vm689_vm3, %v1215_v56, %v1216_v47 }
 0x15d   : > { %v1130_v6 = vmul.f32 %v1128_v59, %v3618_v48  ;;  %v372_v59 = vpop.f32.mrf.mxu1 }
 0x15e   : > { %v835_v19 = vadd.f32 %v3802_v10, %v825_v36 }
 0x15f   : > { %3139 = vmatmul.msk.f32.vlgmr.msra.gmra.mxu0 %vm875_vm7, %v1130_v6  ;;  %v527_v6 = vadd.f32 %v511_v13, %v370_v53 }
 0x160   : > { %v3831_v21 = vmax.f32 %v835_v19, 0.0  ;;  %v514_v19 = vpop.f32.mrf.mxu2 }
 0x161   : > { %v677_v20 = vadd.f32 %v661_v38, %v527_v6 }
 0x162   : > { %3123 = vmatmul.msk.f32.gmra.mxu2 %vm875_vm7, %v3831_v21  ;;  %v1116_v41 = vrot.slane %v3831_v21, 1  ;;  %v1217_v25 = vrot.slane %v3831_v21, 2 }
 0x163   : > { %v808_v48 = vpop.f32.mrf.mxu0 }
 0x164   : > { %v826_v52 = vadd.f32 %v808_v48, %v676_v40  ;;  %v1127_v42 = vsel %vm539_vm5, %v1115_v18, %v1116_v41  ;;  %v3843_v24 = vsel %vm689_vm3, %v1216_v47, %v1217_v25  ;;  %v1037_v18 = vld [vmem:[#allocation2 + $0x1c] sm:$0xf]  ;;  %v373_v48 = vadd.f32 %v372_v59, %v3795_v35  ;;  %v667_v59 = vpop.f32.mrf.mxu3 }
 0x165   : > { %v1131_v39 = vmul.f32 %v1127_v42, %v3595_v32  ;;  %3129 = vmatpush.msk.msrb.mxu3 %vm900_vm6, %v1037_v18  ;;  %v375_v53 = vpop.f32.mrf.mxu1 }
 0x166   : > { %v836_v36 = vadd.f32 %v3802_v10, %v826_v52  ;;  %v528_v42 = vadd.f32 %v514_v19, %v373_v48 }
 0x167   : > { %3140 = vmatmul.msk.f32.gmra.mxu0 %vm875_vm7, %v1131_v39 }
 0x168   : > { %v3848_v7 = vmax.f32 %v836_v36, 0.0  ;;  %v678_v36 = vadd.f32 %v664_v34, %v528_v42  ;;  %v376_v34 = vadd.f32 %v375_v53, %v3797_v62 }
 0x16a   : > { %3124 = vmatmul.msk.f32.gmra.mxu2 %vm875_vm7, %v3848_v7  ;;  %v1117_v32 = vrot.slane %v3848_v7, 1  ;;  %v1218_v47 = vrot.slane %v3848_v7, 2 }
 0x16b   : > { %v811_v30 = vpop.f32.mrf.mxu0 }
 0x16c   : > { %v827_v61 = vadd.f32 %v811_v30, %v677_v20  ;;  %v1126_v13 = vsel %vm539_vm5, %v1116_v41, %v1117_v32  ;;  %v3860_v38 = vsel %vm689_vm3, %v1217_v25, %v1218_v47  ;;  %v517_v25 = vpop.f32.mrf.mxu2 }
 0x16d   : > { %v1132_v40 = vmul.f32 %v1126_v13, %v3630_v2  ;;  %v378_v48 = vpop.f32.mrf.mxu1 }
 0x16e   : > { %v837_v52 = vadd.f32 %v3802_v10, %v827_v61  ;;  %v529_v61 = vadd.f32 %v517_v25, %v376_v34  ;;  %v379_v25 = vadd.f32 %v378_v48, %v3800_v54 }
 0x16f   : > { %3141 = vmatmul.msk.f32.gmra.mxu0 %vm875_vm7, %v1132_v40 }
 0x170   : > { %v3865_v39 = vmax.f32 %v837_v52, 0.0  ;;  %v679_v40 = vadd.f32 %v667_v59, %v529_v61 }
 0x172   : > { %3125 = vmatmul.msk.f32.gmra.mxu2 %vm875_vm7, %v3865_v39  ;;  %v1118_v2 = vrot.slane %v3865_v39, 1  ;;  %v1219_v41 = vrot.slane %v3865_v39, 2 }
 0x173   : > { %v814_v6 = vpop.f32.mrf.mxu0 }
 0x174   : > { %v828_v20 = vadd.f32 %v814_v6, %v678_v36  ;;  %v1125_v35 = vsel %vm539_vm5, %v1117_v32, %v1118_v2  ;;  %v3876_v18 = vsel %vm689_vm3, %v1218_v47, %v1219_v41  ;;  %v520_v42 = vpop.f32.mrf.mxu2 }
 0x175   : > { %v1133_v19 = vmul.f32 %v1125_v35, %v3653_v27  ;;  %v530_v35 = vadd.f32 %v520_v42, %v379_v25 }
 0x176   : > { %v838_v30 = vadd.f32 %v3802_v10, %v828_v20  ;;  %v670_v20 = vpop.f32.mrf.mxu3 }
 0x177   : > { %3142 = vmatmul.msk.f32.gmra.mxu0 %vm875_vm7, %v1133_v19  ;;  %v680_v19 = vadd.f32 %v670_v20, %v530_v35  ;;  %v851_v35 = vrot.slane %v3810_v23, 6 }
 0x178   : > { %v3881_v13 = vmax.f32 %v838_v30, 0.0 }
 0x17a   : > { %3126 = vmatmul.msk.f32.gmra.mxu2 %vm875_vm7, %v3881_v13  ;;  %v1119_v32 = vrot.slane %v3881_v13, 1  ;;  %v1220_v27 = vrot.slane %v3881_v13, 2 }
 0x17b   : > { %v817_v47 = vpop.f32.mrf.mxu0 }
 0x17c   : > { %v829_v52 = vadd.f32 %v817_v47, %v679_v40  ;;  %v1124_v62 = vsel %vm539_vm5, %v1118_v2, %v1119_v32  ;;  %v3892_v36 = vsel %vm689_vm3, %v1219_v41, %v1220_v27  ;;  %v850_v47 = vrot.slane %v3805_v31, 6 }
 0x17d   : > { %v1134_v53 = vmul.f32 %v1124_v62, %v3674_v45 }
 0x17e   : > { %v839_v6 = vadd.f32 %v3802_v10, %v829_v52  ;;  %v1013_v52 = vrot.slane %v3805_v31, 7 }
 0x17f   : > { %3143 = vmatmul.msk.f32.gmra.mxu0 %vm875_vm7, %v1134_v53 }
 0x180   : > { %v3897_v59 = vmax.f32 %v839_v6, 0.0 }
 0x182   : > { %3127 = vmatmul.msk.f32.gmra.mxu2 %vm875_vm7, %v3897_v59  ;;  %v1120_v45 = vrot.slane %v3897_v59, 1  ;;  %v1221_v2 = vrot.slane %v3897_v59, 2 }
 0x183   : > { %v820_v41 = vpop.f32.mrf.mxu0 }
 0x184   : > { %v830_v34 = vadd.f32 %v820_v41, %v680_v19  ;;  %v1123_v54 = vsel %vm539_vm5, %v1119_v32, %v1120_v45  ;;  %v3908_v61 = vsel %vm689_vm3, %v1220_v27, %v1221_v2  ;;  %v1014_v19 = vrot.slane %v3810_v23, 7 }
 0x185   : > { %v1135_v30 = vmul.f32 %v1123_v54, %v3700_v15  ;;  %v1015_v54 = vrot.slane %v3831_v21, 7 }
 0x186   : > { %v840_v40 = vadd.f32 %v3802_v10, %v830_v34 }
 0x187   : > { %3144 = vmatmul.msk.f32.gmra.mxu0 %vm875_vm7, %v1135_v30  ;;  %v1239_v30 = vld [vmem:[#allocation2 + $0x28] sm:$0xf] }
 0x188   : > { %v3912_v48 = vmax.f32 %v840_v40, 0.0  ;;  %3147 = vmatpush.msk.msra.mxu1 %vm900_vm6, %v1239_v30 }
 0x18a   : > { %3128 = vmatmul.msk.f32.gmra.mxu2 %vm875_vm7, %v3912_v48  ;;  %v857_v32 = vrot.slane %v3912_v48, 6  ;;  %v1020_v15 = vrot.slane %v3912_v48, 7  ;;  %v1121_v27 = vrot.slane %v3912_v48, 1  ;;  %v1222_v62 = vrot.slane %v3912_v48, 2 }
 0x18b   : > { %v1233_v48 = vmul.f32 %v3860_v38, %v3730_v37 }
 0x18c   : > { %v865_v10 = vsel %vm177_vm2, %v857_v32, %v850_v47  ;;  %v1028_v42 = vsel %vm389_vm4, %v1020_v15, %v1013_v52  ;;  %v1122_v53 = vsel %vm539_vm5, %v1120_v45, %v1121_v27  ;;  %v3939_v41 = vsel %vm689_vm3, %v1221_v2, %v1222_v62 }
 0x18d   : > { %v866_v25 = vmul.f32 %v865_v10, %v3536_v1  ;;  %v1029_v6 = vmul.f32 %v1028_v42, %v3585_v26  ;;  %v1136_v20 = vmul.f32 %v1122_v53, %v3722_v33  ;;  %v3945_v34 = vsel %vm689_vm3, %v1222_v62, %v1215_v56 }
 0x18e   : > { %v864_v1 = vsel %vm177_vm2, %v850_v47, %v851_v35  ;;  %v1027_v26 = vsel %vm389_vm4, %v1013_v52, %v1014_v19  ;;  %v1129_v33 = vsel %vm539_vm5, %v1121_v27, %v1114_v46  ;;  %v852_v2 = vrot.slane %v3831_v21, 6 }
 0x18f   : > { %3112 = vmatmul.msk.f32.vlgmr.msrb.gmra.mxu1 %vm875_vm7, %v866_v25  ;;  %3130 = vmatmul.msk.f32.vlgmr.msrb.gmra.mxu3 %vm875_vm7, %v1029_v6  ;;  %v867_v23 = vmul.f32 %v864_v1, %v3560_v14  ;;  %v1030_v56 = vmul.f32 %v1027_v26, %v3613_v43  ;;  %v1137_v45 = vmul.f32 %v1129_v33, %v3742_v17  ;;  %v853_v46 = vrot.slane %v3848_v7, 6 }
 0x190   : > { %3145 = vmatmul.msk.f32.gmra.mxu0 %vm875_vm7, %v1136_v20  ;;  %v863_v31 = vsel %vm177_vm2, %v851_v35, %v852_v2  ;;  %v1026_v14 = vsel %vm389_vm4, %v1014_v19, %v1015_v54  ;;  %v1016_v21 = vrot.slane %v3848_v7, 7  ;;  %v854_v52 = vrot.slane %v3865_v39, 6 }
 0x191   : > { %v868_v43 = vmul.f32 %v863_v31, %v3533_v0  ;;  %v1031_v17 = vmul.f32 %v1026_v14, %v3638_v8  ;;  %v862_v40 = vsel %vm177_vm2, %v852_v2, %v853_v46  ;;  %v1017_v7 = vrot.slane %v3865_v39, 7 }
 0x192   : > { %v1025_v47 = vsel %vm389_vm4, %v1015_v54, %v1016_v21  ;;  %v869_v0 = vmul.f32 %v862_v40, %v3555_v11  ;;  %v861_v27 = vsel %vm177_vm2, %v853_v46, %v854_v52  ;;  %v1018_v42 = vrot.slane %v3881_v13, 7 }
 0x193   : > { %v1032_v8 = vmul.f32 %v1025_v47, %v3655_v29  ;;  %v1024_v62 = vsel %vm389_vm4, %v1016_v21, %v1017_v7  ;;  %v870_v10 = vmul.f32 %v861_v27, %v3509_v50  ;;  %v855_v29 = vrot.slane %v3881_v13, 6 }
 0x194   : > { %v1033_v11 = vmul.f32 %v1024_v62, %v3672_v44  ;;  %v1023_v53 = vsel %vm389_vm4, %v1017_v7, %v1018_v42  ;;  %v856_v44 = vrot.slane %v3897_v59, 6  ;;  %v1019_v6 = vrot.slane %v3897_v59, 7 }
 0x195   : > { %v860_v39 = vsel %vm177_vm2, %v854_v52, %v855_v29  ;;  %v1034_v50 = vmul.f32 %v1023_v53, %v3694_v5  ;;  %v1237_v37 = vmul.f32 %v3939_v41, %v3778_v9 }
 0x196   : > { %v871_v25 = vmul.f32 %v860_v39, %v3525_v60  ;;  %v859_v13 = vsel %vm177_vm2, %v855_v29, %v856_v44  ;;  %v1022_v20 = vsel %vm389_vm4, %v1018_v42, %v1019_v6  ;;  %v858_v5 = vsel %vm177_vm2, %v856_v44, %v857_v32 }
 0x197   : > { %3113 = vmatmul.msk.f32.gmra.mxu1 %vm875_vm7, %v867_v23  ;;  %3131 = vmatmul.msk.f32.gmra.mxu3 %vm875_vm7, %v1030_v56  ;;  %v872_v35 = vmul.f32 %v859_v13, %v3588_v28  ;;  %v1035_v60 = vmul.f32 %v1022_v20, %v3712_v22  ;;  %v1021_v59 = vsel %vm389_vm4, %v1019_v6, %v1020_v15 }
 0x198   : > { %3146 = vmatmul.msk.f32.gmra.mxu0 %vm875_vm7, %v1137_v45  ;;  %v873_v19 = vmul.f32 %v858_v5, %v3557_v12  ;;  %v1036_v28 = vmul.f32 %v1021_v59, %v3732_v3  ;;  %v1231_v22 = vmul.f32 %v3826_v4, %v3681_v58  ;;  %v1232_v32 = vmul.f32 %v3843_v24, %v3706_v55  ;;  %v3302_v59 = vld [vmem:[#allocation2 + $0x30] ss:$0 sm:$0xff] }
 0x199   : > { %v1234_v12 = vmul.f32 %v3876_v18, %v3752_v49  ;;  %v1235_v58 = vmul.f32 %v3892_v36, %v3762_v57  ;;  %v1236_v55 = vmul.f32 %v3908_v61, %v3771_v63  ;;  %v1238_v3 = vmul.f32 %v3945_v34, %v3784_v16 }
 0x19f   : > { %3114 = vmatmul.msk.f32.gmra.mxu1 %vm875_vm7, %v868_v43  ;;  %3132 = vmatmul.msk.f32.gmra.mxu3 %vm875_vm7, %v1031_v17 }
 0x1a7   : > { %3115 = vmatmul.msk.f32.gmra.mxu1 %vm875_vm7, %v869_v0  ;;  %3133 = vmatmul.msk.f32.gmra.mxu3 %vm875_vm7, %v1032_v8 }
 0x1af   : > { %3116 = vmatmul.msk.f32.gmra.mxu1 %vm875_vm7, %v870_v10  ;;  %3134 = vmatmul.msk.f32.gmra.mxu3 %vm875_vm7, %v1033_v11 }
 0x1b7   : > { %3117 = vmatmul.msk.f32.gmra.mxu1 %vm875_vm7, %v871_v25  ;;  %3135 = vmatmul.msk.f32.gmra.mxu3 %vm875_vm7, %v1034_v50 }
 0x1bf   : > { %3118 = vmatmul.msk.f32.gmra.mxu1 %vm875_vm7, %v872_v35  ;;  %3136 = vmatmul.msk.f32.gmra.mxu3 %vm875_vm7, %v1035_v60 }
 0x1c7   : > { %3119 = vmatmul.msk.f32.gmra.mxu1 %vm875_vm7, %v873_v19  ;;  %3137 = vmatmul.msk.f32.gmra.mxu3 %vm875_vm7, %v1036_v28 }
 0x1cf   : > { %3148 = vmatmul.msk.f32.vlgmr.msra.gmra.mxu1 %vm875_vm7, %v1231_v22 }
 0x1d5   : > { %v989_v36 = vpop.f32.mrf.mxu2 }
 0x1d7   : > { %3149 = vmatmul.msk.f32.gmra.mxu1 %vm875_vm7, %v1232_v32 }
 0x1dc   : > { %v1183_v61 = vpop.f32.mrf.mxu0 }
 0x1dd   : > { %v992_v1 = vpop.f32.mrf.mxu2 }
 0x1df   : > { %3150 = vmatmul.msk.f32.gmra.mxu1 %vm875_vm7, %v1233_v48 }
 0x1e4   : > { %v1186_v41 = vpop.f32.mrf.mxu0 }
 0x1e5   : > { %v995_v33 = vpop.f32.mrf.mxu2 }
 0x1e7   : > { %3151 = vmatmul.msk.f32.gmra.mxu1 %vm875_vm7, %v1234_v12 }
 0x1ec   : > { %v1189_v16 = vpop.f32.mrf.mxu0 }
 0x1ed   : > { %v998_v34 = vpop.f32.mrf.mxu2 }
 0x1ef   : > { %3152 = vmatmul.msk.f32.gmra.mxu1 %vm875_vm7, %v1235_v58 }
 0x1f4   : > { %v1192_v54 = vpop.f32.mrf.mxu0 }
 0x1f5   : > { %v1001_v14 = vpop.f32.mrf.mxu2 }
 0x1f7   : > { %3153 = vmatmul.msk.f32.gmra.mxu1 %vm875_vm7, %v1236_v55 }
 0x1fc   : > { %v1195_v17 = vpop.f32.mrf.mxu0 }
 0x1fd   : > { %v1004_v21 = vpop.f32.mrf.mxu2 }
 0x1ff   : > { %3154 = vmatmul.msk.f32.gmra.mxu1 %vm875_vm7, %v1237_v37 }
 0x204   : > { %v1198_v47 = vpop.f32.mrf.mxu0 }
 0x205   : > { %v1007_v0 = vpop.f32.mrf.mxu2 }
 0x207   : > { %3155 = vmatmul.msk.f32.gmra.mxu1 %vm875_vm7, %v1238_v3 }
 0x20c   : > { %v921_v49 = vpop.f32.mrf.mxu1 }
 0x20d   : > { %v990_v7 = vadd.f32 %v989_v36, %v921_v49  ;;  %v1201_v62 = vpop.f32.mrf.mxu0  ;;  %v1010_v42 = vpop.f32.mrf.mxu2 }
 0x212   : > { %v1082_v63 = vpop.f32.mrf.mxu3 }
 0x213   : > { %v1106_v10 = vadd.f32 %v1082_v63, %v990_v7 }
 0x214   : > { %v924_v4 = vpop.f32.mrf.mxu1 }
 0x215   : > { %v1207_v50 = vadd.f32 %v1183_v61, %v1106_v10  ;;  %v993_v48 = vadd.f32 %v992_v1, %v924_v4  ;;  %v1204_v37 = vpop.f32.mrf.mxu0 }
 0x21a   : > { %v1085_v26 = vpop.f32.mrf.mxu3 }
 0x21b   : > { %v1107_v3 = vadd.f32 %v1085_v26, %v993_v48  ;;  %v1441_v48 = vld [vmem:[#allocation2 + $0x38] sm:$0xf] }
 0x21c   : > { %v927_v57 = vpop.f32.mrf.mxu1  ;;  %3160 = vmatpush.msk.msra.mxu3 %vm900_vm6, %v1441_v48 }
 0x21d   : > { %v996_v60 = vadd.f32 %v995_v33, %v927_v57 }
 0x222   : > { %v1088_v23 = vpop.f32.mrf.mxu3 }
 0x223   : > { %v1108_v12 = vadd.f32 %v1088_v23, %v996_v60  ;;  %v1358_v60 = vld [vmem:[#allocation2 + $0x398] sm:$0xff] }
 0x224   : > { %v930_v24 = vpop.f32.mrf.mxu1 }
 0x225   : > { %v999_v6 = vadd.f32 %v998_v34, %v930_v24  ;;  %v1209_v61 = vadd.f32 %v1189_v16, %v1108_v12  ;;  %v4071_v12 = vpop.permute.xlu2 %1419 }
 0x22a   : > { %v1091_v45 = vpop.f32.mrf.mxu3 }
 0x22b   : > { %v1109_v19 = vadd.f32 %v1091_v45, %v999_v6 }
 0x22c   : > { %v933_v38 = vpop.f32.mrf.mxu1 }
 0x22d   : > { %v1002_v39 = vadd.f32 %v1001_v14, %v933_v38  ;;  %v1210_v38 = vadd.f32 %v1192_v54, %v1109_v19  ;;  %v1361_v19 = vld [vmem:[#allocation2 + $0x3b0] sm:$0xff] }
 0x232   : > { %v1094_v43 = vpop.f32.mrf.mxu3 }
 0x233   : > { %v1110_v13 = vadd.f32 %v1094_v43, %v1002_v39 }
 0x234   : > { %v936_v18 = vpop.f32.mrf.mxu1 }
 0x235   : > { %v1005_v11 = vadd.f32 %v1004_v21, %v936_v18  ;;  %v1211_v58 = vadd.f32 %v1195_v17, %v1110_v13 }
 0x23a   : > { %v1097_v30 = vpop.f32.mrf.mxu3 }
 0x23b   : > { %v1111_v53 = vadd.f32 %v1097_v30, %v1005_v11 }
 0x23c   : > { %v939_v15 = vpop.f32.mrf.mxu1 }
 0x23d   : > { %v1008_v27 = vadd.f32 %v1007_v0, %v939_v15  ;;  %v1212_v22 = vadd.f32 %v1198_v47, %v1111_v53 }
 0x242   : > { %v1100_v8 = vpop.f32.mrf.mxu3 }
 0x243   : > { %v1112_v29 = vadd.f32 %v1100_v8, %v1008_v27 }
 0x244   : > { %v942_v9 = vpop.f32.mrf.mxu1 }
 0x245   : > { %v1011_v20 = vadd.f32 %v1010_v42, %v942_v9  ;;  %v1213_v35 = vadd.f32 %v1201_v62, %v1112_v29 }
 0x24a   : > { %v1103_v25 = vpop.f32.mrf.mxu3 }
 0x24b   : > { %v1113_v28 = vadd.f32 %v1103_v25, %v1011_v20 }
 0x24c   : > { %v1284_v56 = vpop.f32.mrf.mxu1 }
 0x24d   : > { %v1308_v5 = vadd.f32 %v1284_v56, %v1207_v50  ;;  %v1214_v36 = vadd.f32 %v1204_v37, %v1113_v28  ;;  %v1208_v56 = vadd.f32 %v1186_v41, %v1107_v3  ;;  %v1404_v28 = vld [vmem:[#allocation2 + $0x40] sm:$0xf]  ;;  %v4077_v37 = vpop.permute.xlu2 %1434 }
 0x24f   : > { %v1318_v49 = vadd.f32 %v3302_v59, %v1308_v5  ;;  %v1359_v5 = vld [vmem:[#allocation2 + $0x3a0] sm:$0xff] }
 0x251   : > { %v1326_v33 = vmax.f32 %v1318_v49, 0.0 }
 0x253   : > { %v1334_v17 = vrot.slane %v1326_v33, 1 }
 0x254   : > { %v1287_v2 = vpop.f32.mrf.mxu1 }
 0x255   : > { %v1309_v23 = vadd.f32 %v1287_v2, %v1208_v56 }
 0x257   : > { %v1319_v47 = vadd.f32 %v3302_v59, %v1309_v23 }
 0x259   : > { %v1327_v27 = vmax.f32 %v1319_v47, 0.0 }
 0x25b   : > { %v1335_v53 = vrot.slane %v1327_v27, 1 }
 0x25c   : > { %v1290_v31 = vpop.f32.mrf.mxu1 }
 0x25d   : > { %v1310_v34 = vadd.f32 %v1290_v31, %v1209_v61  ;;  %v1348_v13 = vsel %vm539_vm5, %v1334_v17, %v1335_v53 }
 0x25f   : > { %v1320_v54 = vadd.f32 %v3302_v59, %v1310_v34 }
 0x261   : > { %v1328_v8 = vmax.f32 %v1320_v54, 0.0 }
 0x263   : > { %v1336_v29 = vrot.slane %v1328_v8, 1 }
 0x264   : > { %v1293_v46 = vpop.f32.mrf.mxu1 }
 0x265   : > { %v1311_v57 = vadd.f32 %v1293_v46, %v1210_v38 }
 0x267   : > { %v1321_v14 = vadd.f32 %v3302_v59, %v1311_v57 }
 0x269   : > { %v1329_v16 = vmax.f32 %v1321_v14, 0.0 }
 0x26b   : > { %v1337_v62 = vrot.slane %v1329_v16, 1 }
 0x26c   : > { %v1296_v40 = vpop.f32.mrf.mxu1 }
 0x26d   : > { %v1312_v18 = vadd.f32 %v1296_v40, %v1211_v58  ;;  %v1346_v25 = vsel %vm539_vm5, %v1336_v29, %v1337_v62  ;;  %v4073_v58 = vpop.permute.xlu0 %1424 }
 0x26e   : > { %v1352_v6 = vmax.f32 %v1328_v8, %v1346_v25 }
 0x26f   : > { %v1322_v45 = vadd.f32 %v3302_v59, %v1312_v18  ;;  %v4087_v18 = vpop.permute.xlu2 %1629 }
 0x271   : > { %v1330_v21 = vmax.f32 %v1322_v45, 0.0 }
 0x273   : > { %v1338_v2 = vrot.slane %v1330_v21, 1 }
 0x274   : > { %v1299_v52 = vpop.f32.mrf.mxu1 }
 0x275   : > { %v1313_v55 = vadd.f32 %v1299_v52, %v1212_v22  ;;  %v1345_v42 = vsel %vm539_vm5, %v1337_v62, %v1338_v2  ;;  %v1651_v22 = vld [vmem:[#allocation2 + $0x44] sm:$0xf]  ;;  %v4079_v3 = vpop.permute.xlu0 %1544 }
 0x276   : > { %v1353_v50 = vmax.f32 %v1329_v16, %v1345_v42  ;;  %3175 = vmatpush.msk.msrb.mxu0 %vm900_vm6, %v1651_v22 }
 0x277   : > { %v1323_v15 = vadd.f32 %v3302_v59, %v1313_v55  ;;  %v4075_v55 = vpop.permute.xlu1 %1429 }
 0x279   : > { %v1331_v43 = vmax.f32 %v1323_v15, 0.0 }
 0x27b   : > { %v1339_v46 = vrot.slane %v1331_v43, 1 }
 0x27c   : > { %v1302_v44 = vpop.f32.mrf.mxu1 }
 0x27d   : > { %v1314_v32 = vadd.f32 %v1302_v44, %v1213_v35  ;;  %v1344_v10 = vsel %vm539_vm5, %v1338_v2, %v1339_v46  ;;  %v1347_v44 = vsel %vm539_vm5, %v1335_v53, %v1336_v29  ;;  %v1350_v35 = vmax.f32 %v1326_v33, %v1348_v13 }
 0x27e   : > { %v1354_v39 = vmax.f32 %v1330_v21, %v1344_v10  ;;  %v1351_v20 = vmax.f32 %v1327_v27, %v1347_v44 }
 0x27f   : > { %v1324_v24 = vadd.f32 %v3302_v59, %v1314_v32  ;;  %v1736_v32 = vld [vmem:[#allocation2 + $0x48] sm:$0xf]  ;;  %v4085_v38 = vpop.permute.xlu1 %1549 }
 0x280   : > { %3180 = vmatpush.msk.msrb.mxu1 %vm900_vm6, %v1736_v32 }
 0x281   : > { %v1332_v4 = vmax.f32 %v1324_v24, 0.0  ;;  %v4089_v24 = vpop.permute.xlu0 %1714 }
 0x283   : > { %v1340_v30 = vrot.slane %v1332_v4, 1 }
 0x284   : > { %v1305_v63 = vpop.f32.mrf.mxu1 }
 0x285   : > { %v1315_v9 = vadd.f32 %v1305_v63, %v1214_v36  ;;  %v1343_v52 = vsel %vm539_vm5, %v1339_v46, %v1340_v30 }
 0x286   : > { %v1355_v11 = vmax.f32 %v1331_v43, %v1343_v52 }
 0x287   : > { %v1325_v1 = vadd.f32 %v3302_v59, %v1315_v9  ;;  %v1360_v59 = vld [vmem:[#allocation2 + $0x3a8] sm:$0xff]  ;;  %v4107_v45 = vpop.permute.xlu1 %1554 }
 0x289   : > { %v1333_v26 = vmax.f32 %v1325_v1, 0.0  ;;  %v4113_v23 = vpop.permute.xlu0 %1719 }
 0x28b   : > { %v1341_v40 = vrot.slane %v1333_v26, 1 }
 0x28d   : > { %v1349_v0 = vsel %vm539_vm5, %v1341_v40, %v1334_v17  ;;  %v1342_v41 = vsel %vm539_vm5, %v1340_v30, %v1341_v40  ;;  %v1566_v30 = vld [vmem:[#allocation2 + $0x3c] sm:$0xf] }
 0x28e   : > { %v1357_v31 = vmax.f32 %v1333_v26, %v1349_v0  ;;  %v1356_v7 = vmax.f32 %v1332_v4, %v1342_v41  ;;  %v4109_v4 = vpop.permute.xlu2 %1634  ;;  %3170 = vmatpush.msk.msrb.mxu3 %vm900_vm6, %v1566_v30 }
 0x28f   : > { %v4128_v47 = vpop.permute.xlu1 %1559 }
 0x290   : > { %1383 = vmatpush.msra.mxu2 %v1357_v31 }
 0x291   : > { %v4134_v8 = vpop.permute.xlu0 %1724 }
 0x292   : > { %1384 = vmatpush.msra.mxu2 %v1356_v7 }
 0x294   : > { %1385 = vmatpush.msra.mxu2 %v1355_v11 }
 0x296   : > { %1386 = vmatpush.msra.mxu2 %v1354_v39  ;;  %v4132_v31 = vpop.permute.xlu2 %1639 }
 0x297   : > { %v4155_v53 = vpop.permute.xlu1 %1644 }
 0x298   : > { %1387 = vmatpush.msra.mxu2 %v1353_v50 }
 0x29a   : > { %1388 = vmatpush.msra.mxu2 %v1352_v6 }
 0x29c   : > { %1389 = vmatpush.msra.mxu2 %v1351_v20 }
 0x29e   : > { %1390 = vmatpush.msra.mxu2 %v1350_v35  ;;  %v4157_v25 = vpop.permute.xlu2 %1729 }
 0x29f   : > { %3156 = vmatmul.msk.f32.vlgmr.msra.gmra.mxu2 %vm1362_vm8, %v1358_v60 }
 0x2a0   : > { %3165 = vmatpush.msk.msrb.mxu2 %vm900_vm6, %v1404_v28 }
 0x2a7   : > { %3157 = vmatmul.msk.f32.gmra.mxu2 %vm1362_vm8, %v1359_v5 }
 0x2af   : > { %3158 = vmatmul.msk.f32.gmra.mxu2 %vm1362_vm8, %v1360_v59 }
 0x2b7   : > { %3159 = vmatmul.msk.f32.gmra.mxu2 %vm1362_vm8, %v1361_v19 }
 0x322   : > { %v4081_v49 = vpop.f32.mrf.mxu2 }
 0x323   : > { %3166 = vmatmul.msk.f32.vlgmr.msrb.gmra.mxu2 %vm875_vm7, %v4081_v49  ;;  %v1615_v63 = vrot.slane %v4081_v49, 1  ;;  %v1700_v61 = vrot.slane %v4081_v49, 2  ;;  %v1405_v16 = vrot.slane %v4081_v49, 6  ;;  %v1530_v19 = vrot.slane %v4081_v49, 7 }
 0x32a   : > { %v4091_v36 = vpop.f32.mrf.mxu2 }
 0x32b   : > { %v1616_v57 = vrot.slane %v4091_v36, 1  ;;  %v1701_v15 = vrot.slane %v4091_v36, 2  ;;  %3167 = vmatmul.msk.f32.gmra.mxu2 %vm875_vm7, %v4091_v36  ;;  %v1406_v11 = vrot.slane %v4091_v36, 6  ;;  %v1531_v32 = vrot.slane %v4091_v36, 7 }
 0x32d   : > { %v1621_v9 = vsel %vm539_vm5, %v1615_v63, %v1616_v57  ;;  %v1706_v33 = vsel %vm689_vm3, %v1700_v61, %v1701_v15  ;;  %v1411_v29 = vsel %vm177_vm2, %v1405_v16, %v1406_v11  ;;  %v1536_v48 = vsel %vm389_vm4, %v1530_v19, %v1531_v32 }
 0x32e   : > { %v1647_v56 = vmul.f32 %v4087_v18, %v1621_v9  ;;  %v1732_v34 = vmul.f32 %v4089_v24, %v1706_v33  ;;  %v1438_v50 = vmul.f32 %v4073_v58, %v1411_v29 }
 0x330   : > { %3176 = vmatmul.msk.f32.vlgmr.msrb.gmra.mxu0 %vm875_vm7, %v1647_v56  ;;  %3181 = vmatmul.msk.f32.vlgmr.msrb.gmra.mxu1 %vm875_vm7, %v1732_v34  ;;  %v1795_v56 = vld [vmem:[#allocation2 + $0x68] sm:$0xff] }
 0x332   : > { %v4111_v1 = vpop.f32.mrf.mxu2 }
 0x333   : > { %v1617_v14 = vrot.slane %v4111_v1, 1  ;;  %v1702_v43 = vrot.slane %v4111_v1, 2  ;;  %3168 = vmatmul.msk.f32.gmra.mxu2 %vm875_vm7, %v4111_v1  ;;  %v1407_v6 = vrot.slane %v4111_v1, 6 }
 0x335   : > { %v1620_v26 = vsel %vm539_vm5, %v1616_v57, %v1617_v14  ;;  %v1705_v17 = vsel %vm689_vm3, %v1701_v15, %v1702_v43  ;;  %v1410_v20 = vsel %vm177_vm2, %v1406_v11, %v1407_v6 }
 0x336   : > { %v1648_v54 = vmul.f32 %v4109_v4, %v1620_v26  ;;  %v1733_v21 = vmul.f32 %v4113_v23, %v1705_v17  ;;  %v1439_v35 = vmul.f32 %v4075_v55, %v1410_v20 }
 0x338   : > { %3177 = vmatmul.msk.f32.gmra.mxu0 %vm875_vm7, %v1648_v54  ;;  %3182 = vmatmul.msk.f32.gmra.mxu1 %vm875_vm7, %v1733_v21 }
 0x33a   : > { %v1401_v40 = vpop.f32.mrf.mxu2 }
 0x33b   : > { %v1408_v46 = vrot.slane %v1401_v40, 6  ;;  %v1618_v0 = vrot.slane %v1401_v40, 1  ;;  %v1703_v41 = vrot.slane %v1401_v40, 2  ;;  %3169 = vmatmul.msk.f32.gmra.mxu2 %vm875_vm7, %v1401_v40  ;;  %v1533_v59 = vrot.slane %v1401_v40, 7 }
 0x33d   : > { %v1412_v2 = vsel %vm177_vm2, %v1408_v46, %v1405_v16  ;;  %v1619_v52 = vsel %vm539_vm5, %v1617_v14, %v1618_v0  ;;  %v1704_v7 = vsel %vm689_vm3, %v1702_v43, %v1703_v41  ;;  %v1622_v42 = vsel %vm539_vm5, %v1618_v0, %v1615_v63  ;;  %v1962_v43 = vld [vmem:[#allocation2 + $0x70] sm:$0xff]  ;;  %v1808_v0 = vld [vmem:[#allocation2 + $0x58] sm:$0xff] }
 0x33e   : > { %v1437_v27 = vmul.f32 %v4071_v12, %v1412_v2  ;;  %v1649_v62 = vmul.f32 %v4132_v31, %v1619_v52  ;;  %v1734_v10 = vmul.f32 %v4134_v8, %v1704_v7  ;;  %v1707_v39 = vsel %vm689_vm3, %v1703_v41, %v1700_v61  ;;  %1990 = vmatpush.msra.mxu1 %v1962_v43  ;;  %v1904_v41 = vld [vmem:[#allocation2 + $0x60] sm:$0xff] }
 0x33f   : > { %v1650_v44 = vmul.f32 %v4155_v53, %v1622_v42  ;;  %v1735_v13 = vmul.f32 %v4157_v25, %v1707_v39  ;;  %v1409_v60 = vsel %vm177_vm2, %v1407_v6, %v1408_v46  ;;  %v1537_v28 = vsel %vm389_vm4, %v1533_v59, %v1530_v19  ;;  %v3303_v46 = vld [vmem:[#allocation2 + $0x50] ss:$0 sm:$0xff]  ;;  %1837 = vmatpush.msra.mxu2 %v1808_v0 }
 0x340   : > { %3161 = vmatmul.msk.f32.vlgmr.msra.gmra.mxu3 %vm875_vm7, %v1437_v27  ;;  %3178 = vmatmul.msk.f32.gmra.mxu0 %vm875_vm7, %v1649_v62  ;;  %v1440_v5 = vmul.f32 %v4077_v37, %v1409_v60  ;;  %v1562_v22 = vmul.f32 %v4079_v3, %v1537_v28  ;;  %v1563_v63 = vmul.f32 %v4085_v38, %v1536_v48  ;;  %v1532_v61 = vrot.slane %v4111_v1, 7 }
 0x341   : > { %3183 = vmatmul.msk.f32.gmra.mxu1 %vm875_vm7, %v1734_v10  ;;  %1878 = vmatpush.msra.mxu3 %v1795_v56 }
 0x342   : > { %v1535_v49 = vsel %vm389_vm4, %v1531_v32, %v1532_v61  ;;  %v1534_v36 = vsel %vm389_vm4, %v1532_v61, %v1533_v59  ;;  %1932 = vmatpush.msra.mxu0 %v1904_v41 }
 0x343   : > { %v1564_v57 = vmul.f32 %v4107_v45, %v1535_v49  ;;  %v1565_v15 = vmul.f32 %v4128_v47, %v1534_v36 }
 0x348   : > { %3162 = vmatmul.msk.f32.gmra.mxu3 %vm875_vm7, %v1438_v50  ;;  %3179 = vmatmul.msk.f32.gmra.mxu0 %vm875_vm7, %v1650_v44 }
 0x349   : > { %3184 = vmatmul.msk.f32.gmra.mxu1 %vm875_vm7, %v1735_v13 }
 0x350   : > { %3163 = vmatmul.msk.f32.gmra.mxu3 %vm875_vm7, %v1439_v35 }
 0x358   : > { %3164 = vmatmul.msk.f32.gmra.mxu3 %vm875_vm7, %v1440_v5 }
 0x360   : > { %3171 = vmatmul.msk.f32.vlgmr.msrb.gmra.mxu3 %vm875_vm7, %v1562_v22 }
 0x368   : > { %3172 = vmatmul.msk.f32.gmra.mxu3 %vm875_vm7, %v1563_v63 }
 0x370   : > { %3173 = vmatmul.msk.f32.gmra.mxu3 %vm875_vm7, %v1564_v57 }
 0x378   : > { %3174 = vmatmul.msk.f32.gmra.mxu3 %vm875_vm7, %v1565_v15 }
 0x3a6   : > { %v1518_v1 = vpop.f32.mrf.mxu2 }
 0x3ad   : > { %v1684_v26 = vpop.f32.mrf.mxu0  ;;  %v1769_v17 = vpop.f32.mrf.mxu1 }
 0x3ae   : > { %v1521_v40 = vpop.f32.mrf.mxu2 }
 0x3b5   : > { %v1687_v52 = vpop.f32.mrf.mxu0  ;;  %v1772_v62 = vpop.f32.mrf.mxu1 }
 0x3b6   : > { %v1524_v42 = vpop.f32.mrf.mxu2 }
 0x3bd   : > { %v1690_v6 = vpop.f32.mrf.mxu0 }
 0x3be   : > { %v1775_v60 = vpop.f32.mrf.mxu1  ;;  %v1527_v32 = vpop.f32.mrf.mxu2 }
 0x3c3   : > { %v1474_v9 = vpop.f32.mrf.mxu3 }
 0x3c4   : > { %v1519_v54 = vadd.f32 %v1518_v1, %v1474_v9 }
 0x3c5   : > { %v1693_v9 = vpop.f32.mrf.mxu0 }
 0x3cb   : > { %v1477_v33 = vpop.f32.mrf.mxu3 }
 0x3cc   : > { %v1522_v7 = vadd.f32 %v1521_v40, %v1477_v33 }
 0x3d3   : > { %v1480_v34 = vpop.f32.mrf.mxu3 }
 0x3d4   : > { %v1525_v44 = vadd.f32 %v1524_v42, %v1480_v34  ;;  %v1778_v34 = vpop.f32.mrf.mxu1 }
 0x3db   : > { %v1483_v14 = vpop.f32.mrf.mxu3 }
 0x3dc   : > { %v1528_v63 = vadd.f32 %v1527_v32, %v1483_v14 }
 0x3e3   : > { %v1599_v21 = vpop.f32.mrf.mxu3 }
 0x3e4   : > { %v1611_v30 = vadd.f32 %v1599_v21, %v1519_v54 }
 0x3e6   : > { %v1696_v16 = vadd.f32 %v1684_v26, %v1611_v30  ;;  %v2020_v26 = vld [vmem:[#allocation2 + $0x78] sm:$0xff] }
 0x3e7   : > { %2048 = vmatpush.msrb.mxu2 %v2020_v26 }
 0x3e8   : > { %v1781_v2 = vadd.f32 %v1769_v17, %v1696_v16 }
 0x3ea   : > { %v1787_v27 = vadd.f32 %v3303_v46, %v1781_v2 }
 0x3eb   : > { %v1602_v10 = vpop.f32.mrf.mxu3 }
 0x3ec   : > { %v4193_v11 = vmax.f32 %v1787_v27, 0.0  ;;  %v1612_v29 = vadd.f32 %v1602_v10, %v1522_v7 }
 0x3ee   : > { %3189 = vmatmul.msk.f32.vlgmr.msra.gmra.mxu3 %vm1809_vm9, %v4193_v11  ;;  %v1697_v39 = vadd.f32 %v1687_v52, %v1612_v29  ;;  %v1950_v19 = vrot.slane %v4193_v11, 1  ;;  %v1796_v54 = vrot.slane %v4193_v11, 6  ;;  %v1892_v21 = vrot.slane %v4193_v11, 7 }
 0x3f0   : > { %v1782_v50 = vadd.f32 %v1772_v62, %v1697_v39 }
 0x3f2   : > { %v1788_v13 = vadd.f32 %v3303_v46, %v1782_v50 }
 0x3f3   : > { %v1605_v20 = vpop.f32.mrf.mxu3 }
 0x3f4   : > { %v1613_v35 = vadd.f32 %v1605_v20, %v1525_v44  ;;  %v4197_v5 = vmax.f32 %v1788_v13, 0.0 }
 0x3f6   : > { %v1698_v59 = vadd.f32 %v1690_v6, %v1613_v35  ;;  %v1951_v28 = vrot.slane %v4197_v5, 1  ;;  %3190 = vmatmul.msk.f32.gmra.mxu3 %vm1809_vm9, %v4197_v5  ;;  %v1797_v7 = vrot.slane %v4197_v5, 6  ;;  %v1893_v27 = vrot.slane %v4197_v5, 7 }
 0x3f7   : > { %v2009_v35 = vrot.slane %v4197_v5, 2 }
 0x3f8   : > { %v1783_v22 = vadd.f32 %v1775_v60, %v1698_v59  ;;  %v1956_v48 = vsel %vm539_vm5, %v1950_v19, %v1951_v28  ;;  %v1802_v62 = vsel %vm177_vm2, %v1796_v54, %v1797_v7 }
 0x3f9   : > { %v1958_v49 = vmul.f32 %v1956_v48, %v4087_v18 }
 0x3fa   : > { %v1789_v61 = vadd.f32 %v3303_v46, %v1783_v22 }
 0x3fb   : > { %v1608_v57 = vpop.f32.mrf.mxu3  ;;  %3197 = vmatmul.msk.f32.vlgmr.msra.gmra.mxu1 %vm1809_vm9, %v1958_v49 }
 0x3fc   : > { %v4206_v36 = vmax.f32 %v1789_v61, 0.0  ;;  %v1614_v15 = vadd.f32 %v1608_v57, %v1528_v63 }
 0x3fe   : > { %v1699_v33 = vadd.f32 %v1693_v9, %v1614_v15  ;;  %v1952_v56 = vrot.slane %v4206_v36, 1  ;;  %3191 = vmatmul.msk.f32.gmra.mxu3 %vm1809_vm9, %v4206_v36  ;;  %v1798_v42 = vrot.slane %v4206_v36, 6  ;;  %v1894_v39 = vrot.slane %v4206_v36, 7 }
 0x3ff   : > { %v2010_v59 = vrot.slane %v4206_v36, 2 }
 0x400   : > { %v1784_v1 = vadd.f32 %v1778_v34, %v1699_v33  ;;  %v1955_v14 = vsel %vm539_vm5, %v1951_v28, %v1952_v56  ;;  %v1801_v50 = vsel %vm177_vm2, %v1797_v7, %v1798_v42 }
 0x401   : > { %v1959_v18 = vmul.f32 %v1955_v14, %v4109_v4 }
 0x402   : > { %v1790_v43 = vadd.f32 %v3303_v46, %v1784_v1 }
 0x403   : > { %3198 = vmatmul.msk.f32.gmra.mxu1 %vm1809_vm9, %v1959_v18 }
 0x404   : > { %v1794_v17 = vmax.f32 %v1790_v43, 0.0 }
 0x406   : > { %v1799_v30 = vrot.slane %v1794_v17, 6  ;;  %v1895_v40 = vrot.slane %v1794_v17, 7  ;;  %v1953_v16 = vrot.slane %v1794_v17, 1  ;;  %3192 = vmatmul.msk.f32.gmra.mxu3 %vm1809_vm9, %v1794_v17  ;;  %v2011_v5 = vrot.slane %v1794_v17, 2 }
 0x408   : > { %v1803_v0 = vsel %vm177_vm2, %v1799_v30, %v1796_v54  ;;  %v1899_v4 = vsel %vm389_vm4, %v1895_v40, %v1892_v21  ;;  %v1954_v46 = vsel %vm539_vm5, %v1952_v56, %v1953_v16  ;;  %v1800_v44 = vsel %vm177_vm2, %v1798_v42, %v1799_v30 }
 0x409   : > { %v1804_v41 = vmul.f32 %v1803_v0, %v4071_v12  ;;  %v1900_v2 = vmul.f32 %v1899_v4, %v4079_v3  ;;  %v1960_v52 = vmul.f32 %v1954_v46, %v4132_v31  ;;  %v1898_v12 = vsel %vm389_vm4, %v1892_v21, %v1893_v27  ;;  %v3304_v46 = vld [vmem:[#allocation2 + $0x80] ss:$0 sm:$0xff] }
 0x40a   : > { %v1957_v3 = vsel %vm539_vm5, %v1953_v16, %v1950_v19  ;;  %v1805_v31 = vmul.f32 %v1802_v62, %v4073_v58  ;;  %v1901_v10 = vmul.f32 %v1898_v12, %v4085_v38  ;;  %v1897_v58 = vsel %vm389_vm4, %v1893_v27, %v1894_v39 }
 0x40b   : > { %3185 = vmatmul.msk.f32.vlgmr.msra.gmra.mxu2 %vm1809_vm9, %v1804_v41  ;;  %3193 = vmatmul.msk.f32.vlgmr.msra.gmra.mxu0 %vm1809_vm9, %v1900_v2  ;;  %v1961_v29 = vmul.f32 %v1957_v3, %v4155_v53  ;;  %v1806_v38 = vmul.f32 %v1801_v50, %v4075_v55  ;;  %v1902_v53 = vmul.f32 %v1897_v58, %v4107_v45  ;;  %v2008_v55 = vrot.slane %v4193_v11, 2 }
 0x40c   : > { %3199 = vmatmul.msk.f32.gmra.mxu1 %vm1809_vm9, %v1960_v52  ;;  %v1896_v6 = vsel %vm389_vm4, %v1894_v39, %v1895_v40  ;;  %v1807_v13 = vmul.f32 %v1800_v44, %v4077_v37  ;;  %v2013_v37 = vsel %vm689_vm3, %v2009_v35, %v2010_v59  ;;  %v2012_v11 = vsel %vm689_vm3, %v2010_v59, %v2011_v5 }
 0x40d   : > { %v1903_v20 = vmul.f32 %v1896_v6, %v4128_v47  ;;  %v2014_v45 = vsel %vm689_vm3, %v2008_v55, %v2009_v35  ;;  %v2017_v47 = vmul.f32 %v2013_v37, %v4113_v23  ;;  %v2018_v19 = vmul.f32 %v2012_v11, %v4134_v8  ;;  %v2120_v11 = vld [vmem:[#allocation2 + $0x98] sm:$0xff] }
 0x40e   : > { %v2016_v60 = vmul.f32 %v2014_v45, %v4089_v24  ;;  %v2015_v24 = vsel %vm689_vm3, %v2011_v5, %v2008_v55  ;;  %v2089_v5 = vld [vmem:[#allocation2 + $0x460] sm:$0xff]  ;;  %2190 = vmatpush.msrb.mxu0 %v2120_v11 }
 0x40f   : > { %v2019_v28 = vmul.f32 %v2015_v24, %v4157_v25  ;;  %v2216_v24 = vld [vmem:[#allocation2 + $0x90] sm:$0xff] }
 0x410   : > { %2238 = vmatpush.msrb.mxu1 %v2216_v24 }
 0x413   : > { %3186 = vmatmul.msk.f32.gmra.mxu2 %vm1809_vm9, %v1805_v31  ;;  %3194 = vmatmul.msk.f32.gmra.mxu0 %vm1809_vm9, %v1901_v10 }
 0x414   : > { %3200 = vmatmul.msk.f32.gmra.mxu1 %vm1809_vm9, %v1961_v29 }
 0x41b   : > { %3187 = vmatmul.msk.f32.gmra.mxu2 %vm1809_vm9, %v1806_v38  ;;  %3195 = vmatmul.msk.f32.gmra.mxu0 %vm1809_vm9, %v1902_v53 }
 0x423   : > { %3188 = vmatmul.msk.f32.gmra.mxu2 %vm1809_vm9, %v1807_v13  ;;  %3196 = vmatmul.msk.f32.gmra.mxu0 %vm1809_vm9, %v1903_v20 }
 0x42b   : > { %3201 = vmatmul.msk.f32.vlgmr.msrb.gmra.mxu2 %vm1809_vm9, %v2016_v60 }
 0x433   : > { %3202 = vmatmul.msk.f32.gmra.mxu2 %vm1809_vm9, %v2017_v47  ;;  %v2088_v47 = vld [vmem:[#allocation2 + $0x458] sm:$0xff] }
 0x43b   : > { %3203 = vmatmul.msk.f32.gmra.mxu2 %vm1809_vm9, %v2018_v19  ;;  %v2139_v19 = vld [vmem:[#allocation2 + $0x88] sm:$0xff] }
 0x443   : > { %3204 = vmatmul.msk.f32.gmra.mxu2 %vm1809_vm9, %v2019_v28  ;;  %v2266_v28 = vld [vmem:[#allocation2 + $0xa0] sm:$0xff] }
 0x444   : > { %2288 = vmatpush.msra.mxu2 %v2266_v28 }
 0x471   : > { %v1880_v23 = vpop.f32.mrf.mxu3 }
 0x478   : > { %v1992_v61 = vpop.f32.mrf.mxu1 }
 0x479   : > { %v1883_v57 = vpop.f32.mrf.mxu3 }
 0x480   : > { %v1995_v8 = vpop.f32.mrf.mxu1 }
 0x481   : > { %v1886_v9 = vpop.f32.mrf.mxu3 }
 0x488   : > { %v1934_v63 = vpop.f32.mrf.mxu0 }
 0x489   : > { %v1998_v25 = vpop.f32.mrf.mxu1  ;;  %v1889_v26 = vpop.f32.mrf.mxu3 }
 0x48e   : > { %v1839_v22 = vpop.f32.mrf.mxu2 }
 0x48f   : > { %v1881_v34 = vadd.f32 %v1880_v23, %v1839_v22  ;;  %v2316_v22 = vld [vmem:[#allocation2 + $0xa8] sm:$0xff] }
 0x490   : > { %v1937_v36 = vpop.f32.mrf.mxu0 }
 0x491   : > { %v1946_v18 = vadd.f32 %v1934_v63, %v1881_v34  ;;  %v2001_v7 = vpop.f32.mrf.mxu1 }
 0x493   : > { %v2004_v30 = vadd.f32 %v1992_v61, %v1946_v18 }
 0x496   : > { %v1842_v32 = vpop.f32.mrf.mxu2 }
 0x497   : > { %v1884_v14 = vadd.f32 %v1883_v57, %v1842_v32  ;;  %v4292_v32 = vpop.permute.xlu1 %2134 }
 0x498   : > { %v1940_v33 = vpop.f32.mrf.mxu0 }
 0x499   : > { %v1947_v17 = vadd.f32 %v1937_v36, %v1884_v14 }
 0x49b   : > { %v2005_v41 = vadd.f32 %v1995_v8, %v1947_v17 }
 0x49e   : > { %v1845_v48 = vpop.f32.mrf.mxu2 }
 0x49f   : > { %v1887_v1 = vadd.f32 %v1886_v9, %v1845_v48  ;;  %v4298_v9 = vpop.permute.xlu2 %2256 }
 0x4a0   : > { %v1943_v16 = vpop.f32.mrf.mxu0 }
 0x4a1   : > { %v1948_v43 = vadd.f32 %v1940_v33, %v1887_v1  ;;  %v4300_v33 = vpop.permute.xlu0 %2129 }
 0x4a3   : > { %v2006_v40 = vadd.f32 %v1998_v25, %v1948_v43 }
 0x4a6   : > { %v1848_v49 = vpop.f32.mrf.mxu2 }
 0x4a7   : > { %v1890_v54 = vadd.f32 %v1889_v26, %v1848_v49  ;;  %v4295_v49 = vpop.permute.xlu1 %2206 }
 0x4a9   : > { %v1949_v0 = vadd.f32 %v1943_v16, %v1890_v54 }
 0x4ab   : > { %v2007_v12 = vadd.f32 %v2001_v7, %v1949_v0 }
 0x4ae   : > { %v2050_v15 = vpop.f32.mrf.mxu2 }
 0x4af   : > { %v2062_v4 = vadd.f32 %v2050_v15, %v2004_v30  ;;  %v4320_v54 = vpop.permute.xlu1 %2211 }
 0x4b1   : > { %v2068_v27 = vadd.f32 %v3304_v46, %v2062_v4 }
 0x4b3   : > { %v2072_v29 = vmax.f32 %v2068_v27, 0.0 }
 0x4b5   : > { %v2076_v38 = vrot.slane %v2072_v29, 1 }
 0x4b6   : > { %v2053_v56 = vpop.f32.mrf.mxu2 }
 0x4b7   : > { %v2063_v52 = vadd.f32 %v2053_v56, %v2005_v41 }
 0x4b9   : > { %v2069_v31 = vadd.f32 %v3304_v46, %v2063_v52 }
 0x4bb   : > { %v2073_v50 = vmax.f32 %v2069_v31, 0.0  ;;  %v2430_v31 = vld [vmem:[#allocation2 + $0xd0] sm:$0xff] }
 0x4bc   : > { %2451 = vmatpush.msrb.mxu2 %v2430_v31 }
 0x4bd   : > { %v2077_v6 = vrot.slane %v2073_v50, 1 }
 0x4be   : > { %v2056_v21 = vpop.f32.mrf.mxu2 }
 0x4bf   : > { %v2064_v2 = vadd.f32 %v2056_v21, %v2006_v40  ;;  %v2082_v60 = vsel %vm539_vm5, %v2076_v38, %v2077_v6  ;;  %v4322_v21 = vpop.permute.xlu2 %2261 }
 0x4c0   : > { %v2084_v37 = vmax.f32 %v2072_v29, %v2082_v60 }
 0x4c1   : > { %v2070_v62 = vadd.f32 %v3304_v46, %v2064_v2 }
 0x4c3   : > { %v2074_v42 = vmax.f32 %v2070_v62, 0.0  ;;  %v2355_v62 = vld [vmem:[#allocation2 + $0xe0] sm:$0xff] }
 0x4c4   : > { %2414 = vmatpush.msra.mxu1 %v2355_v62 }
 0x4c5   : > { %v2078_v53 = vrot.slane %v2074_v42, 1 }
 0x4c6   : > { %v2059_v3 = vpop.f32.mrf.mxu2 }
 0x4c7   : > { %v2065_v10 = vadd.f32 %v2059_v3, %v2007_v12  ;;  %v2081_v55 = vsel %vm539_vm5, %v2077_v6, %v2078_v53  ;;  %v2354_v12 = vld [vmem:[#allocation2 + $0xd8] sm:$0xff]  ;;  %v2363_v3 = vld [vmem:[#allocation2 + $0xc0] sm:$0xff] }
 0x4c8   : > { %v2085_v59 = vmax.f32 %v2073_v50, %v2081_v55  ;;  %2415 = vmatpush.msra.mxu1 %v2354_v12  ;;  %2385 = vmatpush.msra.mxu0 %v2363_v3  ;;  %v2468_v50 = vld [vmem:[#allocation2 + $0xe8] sm:$0xff] }
 0x4c9   : > { %v2071_v39 = vadd.f32 %v3304_v46, %v2065_v10  ;;  %v4330_v46 = vpop.permute.xlu0 %2306  ;;  %v2469_v10 = vld [vmem:[#allocation2 + $0xf0] sm:$0xff] }
 0x4cb   : > { %v2075_v58 = vmax.f32 %v2071_v39, 0.0  ;;  %v2429_v39 = vld [vmem:[#allocation2 + $0xc8] sm:$0xff] }
 0x4cc   : > { %2452 = vmatpush.msrb.mxu2 %v2429_v39 }
 0x4cd   : > { %v2079_v44 = vrot.slane %v2075_v58, 1 }
 0x4cf   : > { %v2083_v13 = vsel %vm539_vm5, %v2079_v44, %v2076_v38  ;;  %v2080_v20 = vsel %vm539_vm5, %v2078_v53, %v2079_v44 }
 0x4d0   : > { %v2087_v35 = vmax.f32 %v2075_v58, %v2083_v13  ;;  %v2086_v45 = vmax.f32 %v2074_v42, %v2080_v20  ;;  %v2362_v42 = vld [vmem:[#allocation2 + $0xb8] sm:$0xff]  ;;  %v2508_v20 = vld [vmem:[#allocation2 + $0x100] sm:$0xff] }
 0x4d1   : > { %v4338_v7 = vpop.permute.xlu0 %2311  ;;  %2386 = vmatpush.msra.mxu0 %v2362_v42 }
 0x4d2   : > { %2109 = vmatpush.msrb.mxu3 %v2087_v35  ;;  %v2507_v35 = vld [vmem:[#allocation2 + $0xf8] sm:$0xff] }
 0x4d4   : > { %2110 = vmatpush.msrb.mxu3 %v2086_v45 }
 0x4d6   : > { %2111 = vmatpush.msrb.mxu3 %v2085_v59  ;;  %v3305_v59 = vld [vmem:[#allocation2 + $0xb0] ss:$0 sm:$0xff] }
 0x4d8   : > { %2112 = vmatpush.msrb.mxu3 %v2084_v37 }
 0x4d9   : > { %3205 = vmatmul.msk.f32.vlgmr.msrb.gmra.mxu3 %vm2090_vm10, %v2088_v47 }
 0x4da   : > { %2161 = vmatpush.msra.mxu3 %v2139_v19 }
 0x4dc   : > { %2338 = vmatpush.msrb.mxu3 %v2316_v22 }
 0x4e1   : > { %3206 = vmatmul.msk.f32.gmra.mxu3 %vm2090_vm10, %v2089_v5 }
 0x55c   : > { %v2114_v23 = vpop.f32.mrf.mxu3 }
 0x55d   : > { %3209 = vmatmul.msk.f32.vlgmr.msrb.gmra.mxu0 %vm1809_vm9, %v2114_v23  ;;  %v2121_v48 = vrot.slane %v2114_v23, 6  ;;  %v2198_v63 = vrot.slane %v2114_v23, 7  ;;  %v2248_v57 = vrot.slane %v2114_v23, 1  ;;  %v2298_v4 = vrot.slane %v2114_v23, 2 }
 0x55e   : > { %2529 = vmatpush.msrb.mxu0 %v2508_v20 }
 0x560   : > { %2530 = vmatpush.msrb.mxu0 %v2507_v35 }
 0x564   : > { %v2117_v61 = vpop.f32.mrf.mxu3 }
 0x565   : > { %v2122_v36 = vrot.slane %v2117_v61, 6  ;;  %v2199_v15 = vrot.slane %v2117_v61, 7  ;;  %v2249_v8 = vrot.slane %v2117_v61, 1  ;;  %3210 = vmatmul.msk.f32.gmra.mxu0 %vm1809_vm9, %v2117_v61  ;;  %v2299_v16 = vrot.slane %v2117_v61, 2 }
 0x567   : > { %v2124_v56 = vsel %vm177_vm2, %v2122_v36, %v2121_v48  ;;  %v2201_v34 = vsel %vm389_vm4, %v2199_v15, %v2198_v63  ;;  %v2250_v1 = vsel %vm539_vm5, %v2248_v57, %v2249_v8  ;;  %v2123_v43 = vsel %vm177_vm2, %v2121_v48, %v2122_v36 }
 0x568   : > { %v2137_v14 = vmul.f32 %v4300_v33, %v2124_v56  ;;  %v2214_v25 = vmul.f32 %v4295_v49, %v2201_v34  ;;  %v2264_v18 = vmul.f32 %v4298_v9, %v2250_v1  ;;  %v2200_v26 = vsel %vm389_vm4, %v2198_v63, %v2199_v15 }
 0x569   : > { %v2251_v17 = vsel %vm539_vm5, %v2249_v8, %v2248_v57  ;;  %v2138_v30 = vmul.f32 %v4292_v32, %v2123_v43  ;;  %v2215_v40 = vmul.f32 %v4320_v54, %v2200_v26  ;;  %v2300_v41 = vsel %vm689_vm3, %v2298_v4, %v2299_v16 }
 0x56a   : > { %3207 = vmatmul.msk.f32.vlgmr.msra.gmra.mxu3 %vm1809_vm9, %v2137_v14  ;;  %3211 = vmatmul.msk.f32.vlgmr.msrb.gmra.mxu1 %vm1809_vm9, %v2214_v25  ;;  %v2265_v0 = vmul.f32 %v4322_v21, %v2251_v17  ;;  %v2314_v2 = vmul.f32 %v4330_v46, %v2300_v41  ;;  %v2301_v52 = vsel %vm689_vm3, %v2299_v16, %v2298_v4 }
 0x56b   : > { %3213 = vmatmul.msk.f32.vlgmr.msra.gmra.mxu2 %vm1809_vm9, %v2264_v18  ;;  %v2315_v27 = vmul.f32 %v4338_v7, %v2301_v52  ;;  %2490 = vmatpush.msra.mxu3 %v2469_v10 }
 0x56d   : > { %2491 = vmatpush.msra.mxu3 %v2468_v50 }
 0x572   : > { %3208 = vmatmul.msk.f32.gmra.mxu3 %vm1809_vm9, %v2138_v30  ;;  %3212 = vmatmul.msk.f32.gmra.mxu1 %vm1809_vm9, %v2215_v40 }
 0x573   : > { %3214 = vmatmul.msk.f32.gmra.mxu2 %vm1809_vm9, %v2265_v0 }
 0x57a   : > { %3215 = vmatmul.msk.f32.vlgmr.msrb.gmra.mxu3 %vm1809_vm9, %v2314_v2 }
 0x582   : > { %3216 = vmatmul.msk.f32.gmra.mxu3 %vm1809_vm9, %v2315_v27  ;;  %v2577_v27 = vld [vmem:[#allocation2 + $0x138] sm:$0xff] }
 0x583   : > { %2628 = vmatpush.msrb.mxu3 %v2577_v27  ;;  %v2798_v27 = vld [vmem:[#allocation2 + $0x188] sm:$0xff] }
 0x5da   : > { %v2192_v58 = vpop.f32.mrf.mxu0 }
 0x5e2   : > { %v2195_v55 = vpop.f32.mrf.mxu0 }
 0x5e7   : > { %v2240_v53 = vpop.f32.mrf.mxu1 }
 0x5ed   : > { %v2163_v29 = vpop.f32.mrf.mxu3 }
 0x5ee   : > { %v2193_v38 = vadd.f32 %v2192_v58, %v2163_v29  ;;  %v2290_v13 = vpop.f32.mrf.mxu2 }
 0x5ef   : > { %v2243_v5 = vpop.f32.mrf.mxu1 }
 0x5f0   : > { %v2246_v6 = vadd.f32 %v2240_v53, %v2193_v38  ;;  %v3306_v38 = vld [vmem:[#allocation2 + $0x108] ss:$0 sm:$0xff] }
 0x5f2   : > { %v2296_v45 = vadd.f32 %v2290_v13, %v2246_v6 }
 0x5f5   : > { %v2166_v44 = vpop.f32.mrf.mxu3 }
 0x5f6   : > { %v2196_v60 = vadd.f32 %v2195_v55, %v2166_v44  ;;  %v2293_v28 = vpop.f32.mrf.mxu2 }
 0x5f8   : > { %v2247_v11 = vadd.f32 %v2243_v5, %v2196_v60 }
 0x5fa   : > { %v2297_v22 = vadd.f32 %v2293_v28, %v2247_v11  ;;  %v2552_v11 = vld [vmem:[#allocation2 + $0x4b8] sm:$0xff]  ;;  %v2643_v28 = vld [vmem:[#allocation2 + $0x128] sm:$0xff] }
 0x5fd   : > { %v2340_v37 = vpop.f32.mrf.mxu3 }
 0x5fe   : > { %v2346_v47 = vadd.f32 %v2340_v37, %v2296_v45 }
 0x600   : > { %v2350_v19 = vadd.f32 %v3305_v59, %v2346_v47 }
 0x602   : > { %v2352_v24 = vmax.f32 %v2350_v19, 0.0  ;;  %v2576_v19 = vld [vmem:[#allocation2 + $0x130] sm:$0xff] }
 0x603   : > { %2629 = vmatpush.msrb.mxu3 %v2576_v19  ;;  %v2917_v19 = vld [vmem:[#allocation2 + $0x218] sm:$0xff] }
 0x604   : > { %3219 = vmatmul.msk.f32.vlgmr.msra.gmra.mxu1 %vm2364_vm11, %v2352_v24  ;;  %v2356_v57 = vrot.slane %v2352_v24, 6  ;;  %v2423_v36 = vrot.slane %v2352_v24, 7  ;;  %v2462_v15 = vrot.slane %v2352_v24, 1  ;;  %v2501_v0 = vrot.slane %v2352_v24, 2  ;;  %v2587_v24 = vld [vmem:[#allocation2 + $0x118] sm:$0xff] }
 0x605   : > { %v2343_v23 = vpop.f32.mrf.mxu3  ;;  %2605 = vmatpush.msra.mxu2 %v2587_v24  ;;  %v2916_v24 = vld [vmem:[#allocation2 + $0x210] sm:$0xff] }
 0x606   : > { %v2347_v48 = vadd.f32 %v2343_v23, %v2297_v22  ;;  %v2586_v22 = vld [vmem:[#allocation2 + $0x110] sm:$0xff]  ;;  %v2642_v23 = vld [vmem:[#allocation2 + $0x120] sm:$0xff] }
 0x607   : > { %2606 = vmatpush.msra.mxu2 %v2586_v22 }
 0x608   : > { %v2351_v63 = vadd.f32 %v3305_v59, %v2347_v48  ;;  %v2711_v48 = vld [vmem:[#allocation2 + $0x158] sm:$0xff] }
 0x60a   : > { %v2353_v61 = vmax.f32 %v2351_v63, 0.0  ;;  %v2677_v63 = vld [vmem:[#allocation2 + $0x148] sm:$0xff] }
 0x60c   : > { %v2357_v8 = vrot.slane %v2353_v61, 6  ;;  %v2424_v56 = vrot.slane %v2353_v61, 7  ;;  %v2463_v34 = vrot.slane %v2353_v61, 1  ;;  %3220 = vmatmul.msk.f32.gmra.mxu1 %vm2364_vm11, %v2353_v61 }
 0x60e   : > { %v2359_v1 = vsel %vm177_vm2, %v2357_v8, %v2356_v57  ;;  %v2426_v14 = vsel %vm389_vm4, %v2424_v56, %v2423_v36  ;;  %v2464_v25 = vsel %vm539_vm5, %v2462_v15, %v2463_v34  ;;  %v2358_v17 = vsel %vm177_vm2, %v2356_v57, %v2357_v8  ;;  %v4381_v57 = vpop.permute.xlu2 %2582 }
 0x60f   : > { %v2360_v18 = vmul.f32 %v2359_v1, %v4300_v33  ;;  %v2427_v43 = vmul.f32 %v2426_v14, %v4295_v49  ;;  %v2466_v26 = vmul.f32 %v2464_v25, %v4298_v9  ;;  %v2425_v30 = vsel %vm389_vm4, %v2423_v36, %v2424_v56  ;;  %v4390_v25 = vpop.permute.xlu1 %2706 }
 0x610   : > { %v2465_v40 = vsel %vm539_vm5, %v2463_v34, %v2462_v15  ;;  %v2361_v33 = vmul.f32 %v2358_v17, %v4292_v32  ;;  %v2428_v49 = vmul.f32 %v2425_v30, %v4320_v54  ;;  %v2502_v9 = vrot.slane %v2353_v61, 2  ;;  %v2676_v61 = vld [vmem:[#allocation2 + $0x140] sm:$0xff] }
 0x611   : > { %3217 = vmatmul.msk.f32.vlgmr.msra.gmra.mxu0 %vm2364_vm11, %v2360_v18  ;;  %3221 = vmatmul.msk.f32.vlgmr.msrb.gmra.mxu2 %vm2364_vm11, %v2427_v43  ;;  %v2467_v16 = vmul.f32 %v2465_v40, %v4322_v21  ;;  %v2743_v30 = vld [vmem:[#allocation2 + $0x1c0] sm:$0xff]  ;;  %v2742_v40 = vld [vmem:[#allocation2 + $0x1b8] sm:$0xff] }
 0x612   : > { %3223 = vmatmul.msk.f32.vlgmr.msra.gmra.mxu3 %vm2364_vm11, %v2466_v26  ;;  %v2503_v4 = vsel %vm689_vm3, %v2501_v0, %v2502_v9  ;;  %v2504_v32 = vsel %vm689_vm3, %v2502_v9, %v2501_v0  ;;  %2695 = vmatpush.msrb.mxu2 %v2677_v63  ;;  %v2673_v26 = vpop.permute.xlu0 %2672  ;;  %v2801_v9 = vld [vmem:[#allocation2 + $0x1a0] sm:$0xff]  ;;  %v2748_v0 = vld [vmem:[#allocation2 + $0x178] sm:$0xff] }
 0x613   : > { %v2505_v41 = vmul.f32 %v2503_v4, %v4330_v46  ;;  %v2506_v54 = vmul.f32 %v2504_v32, %v4338_v7  ;;  %2729 = vmatpush.msra.mxu3 %v2711_v48  ;;  %v2740_v4 = vld [vmem:[#allocation2 + $0x1a8] sm:$0xff]  ;;  %v2830_v32 = vld [vmem:[#allocation2 + $0x1d8] sm:$0xff] }
 0x614   : > { %2696 = vmatpush.msrb.mxu2 %v2676_v61 }
 0x615   : > { %2730 = vmatpush.msra.mxu3 %v2710_v51 }
 0x616   : > { %v4384_v56 = vpop.permute.xlu2 %2638 }
 0x619   : > { %3218 = vmatmul.msk.f32.gmra.mxu0 %vm2364_vm11, %v2361_v33  ;;  %3222 = vmatmul.msk.f32.gmra.mxu2 %vm2364_vm11, %v2428_v49  ;;  %v2749_v33 = vld [vmem:[#allocation2 + $0x180] sm:$0xff]  ;;  %v2741_v49 = vld [vmem:[#allocation2 + $0x1b0] sm:$0xff] }
 0x61a   : > { %3224 = vmatmul.msk.f32.gmra.mxu3 %vm2364_vm11, %v2467_v16  ;;  %2765 = vmatpush.msra.mxu0 %v2749_v33  ;;  %v2831_v16 = vld [vmem:[#allocation2 + $0x1e0] sm:$0xff] }
 0x61c   : > { %2766 = vmatpush.msra.mxu0 %v2748_v0 }
 0x621   : > { %3225 = vmatmul.msk.f32.vlgmr.msrb.gmra.mxu0 %vm2364_vm11, %v2505_v41  ;;  %v2800_v41 = vld [vmem:[#allocation2 + $0x198] sm:$0xff] }
 0x629   : > { %3226 = vmatmul.msk.f32.gmra.mxu0 %vm2364_vm11, %v2506_v54  ;;  %v2747_v54 = vld [vmem:[#allocation2 + $0x170] sm:$0xff] }
 0x62a   : > { %2767 = vmatpush.msra.mxu0 %v2747_v54 }
 0x681   : > { %v2417_v2 = vpop.f32.mrf.mxu1 }
 0x689   : > { %v2420_v10 = vpop.f32.mrf.mxu1 }
 0x68e   : > { %v2388_v21 = vpop.f32.mrf.mxu0 }
 0x68f   : > { %v2418_v12 = vadd.f32 %v2417_v2, %v2388_v21  ;;  %v2799_v21 = vld [vmem:[#allocation2 + $0x190] sm:$0xff] }
 0x690   : > { %v2829_v2 = vld [vmem:[#allocation2 + $0x1d0] sm:$0xff] }
 0x694   : > { %v2454_v52 = vpop.f32.mrf.mxu2 }
 0x695   : > { %v2493_v3 = vpop.f32.mrf.mxu3  ;;  %v2460_v31 = vadd.f32 %v2454_v52, %v2418_v12  ;;  %v2746_v52 = vld [vmem:[#allocation2 + $0x168] sm:$0xff]  ;;  %v2861_v12 = vld [vmem:[#allocation2 + $0x200] sm:$0xff] }
 0x696   : > { %v2391_v62 = vpop.f32.mrf.mxu0  ;;  %2768 = vmatpush.msra.mxu0 %v2746_v52 }
 0x697   : > { %v2499_v42 = vadd.f32 %v2493_v3, %v2460_v31  ;;  %v2421_v39 = vadd.f32 %v2420_v10, %v2391_v62  ;;  %v2828_v62 = vld [vmem:[#allocation2 + $0x1c8] sm:$0xff]  ;;  %v2860_v3 = vld [vmem:[#allocation2 + $0x1f8] sm:$0xff]  ;;  %v2859_v31 = vld [vmem:[#allocation2 + $0x1f0] sm:$0xff] }
 0x698   : > { %2877 = vmatpush.msrb.mxu0 %v2861_v12  ;;  %v2858_v10 = vld [vmem:[#allocation2 + $0x1e8] sm:$0xff] }
 0x69a   : > { %2878 = vmatpush.msrb.mxu0 %v2860_v3 }
 0x69c   : > { %v2457_v46 = vpop.f32.mrf.mxu2  ;;  %2879 = vmatpush.msrb.mxu0 %v2859_v31 }
 0x69d   : > { %v2461_v50 = vadd.f32 %v2457_v46, %v2421_v39  ;;  %v2496_v7 = vpop.f32.mrf.mxu3 }
 0x69e   : > { %v2532_v29 = vpop.f32.mrf.mxu0  ;;  %2880 = vmatpush.msrb.mxu0 %v2858_v10 }
 0x69f   : > { %v2538_v58 = vadd.f32 %v2532_v29, %v2499_v42  ;;  %v2500_v53 = vadd.f32 %v2496_v7, %v2461_v50  ;;  %v3307_v7 = vld [vmem:[#allocation2 + $0x160] ss:$0 sm:$0xff] }
 0x6a1   : > { %v2542_v44 = vadd.f32 %v3306_v38, %v2538_v58 }
 0x6a3   : > { %v2544_v20 = vmax.f32 %v2542_v44, 0.0 }
 0x6a5   : > { %v2546_v45 = vrot.slane %v2544_v20, 1 }
 0x6a6   : > { %v2535_v6 = vpop.f32.mrf.mxu0 }
 0x6a7   : > { %v2539_v13 = vadd.f32 %v2535_v6, %v2500_v53 }
 0x6a9   : > { %v2543_v35 = vadd.f32 %v3306_v38, %v2539_v13 }
 0x6ab   : > { %v2545_v55 = vmax.f32 %v2543_v35, 0.0 }
 0x6ad   : > { %v2547_v60 = vrot.slane %v2545_v55, 1 }
 0x6af   : > { %v2549_v59 = vsel %vm539_vm5, %v2547_v60, %v2546_v45  ;;  %v2548_v37 = vsel %vm539_vm5, %v2546_v45, %v2547_v60 }
 0x6b0   : > { %v2551_v47 = vmax.f32 %v2545_v55, %v2549_v59  ;;  %v2550_v5 = vmax.f32 %v2544_v20, %v2548_v37 }
 0x6b2   : > { %2570 = vmatpush.msrb.mxu1 %v2551_v47 }
 0x6b4   : > { %2571 = vmatpush.msrb.mxu1 %v2550_v5  ;;  %v2919_v5 = vld [vmem:[#allocation2 + $0x228] sm:$0xff] }
 0x6b5   : > { %3227 = vmatmul.msk.f32.vlgmr.msrb.gmra.mxu1 %vm2364_vm11, %v2552_v11  ;;  %v2918_v11 = vld [vmem:[#allocation2 + $0x220] sm:$0xff] }
 0x6b6   : > { %2661 = vmatpush.msra.mxu1 %v2643_v28 }
 0x6b8   : > { %2662 = vmatpush.msra.mxu1 %v2642_v23 }
 0x6ba   : > { %2788 = vmatpush.msrb.mxu1 %v2743_v30 }
 0x6bc   : > { %2789 = vmatpush.msrb.mxu1 %v2742_v40 }
 0x6be   : > { %2790 = vmatpush.msrb.mxu1 %v2741_v49  ;;  %v2948_v49 = vld [vmem:[#allocation2 + $0x250] sm:$0x1] }
 0x6c0   : > { %2791 = vmatpush.msrb.mxu1 %v2740_v4 }
 0x732   : > { %v2573_v36 = vpop.f32.mrf.mxu1 }
 0x733   : > { %v2578_v15 = vrot.slane %v2573_v36, 6  ;;  %v2634_v8 = vrot.slane %v2573_v36, 7  ;;  %3229 = vmatmul.msk.f32.vlgmr.msrb.gmra.mxu3 %vm2364_vm11, %v2573_v36  ;;  %v2702_v14 = vrot.slane %v2573_v36, 2  ;;  %v2668_v18 = vrot.slane %v2573_v36, 1 }
 0x734   : > { %2847 = vmatpush.msrb.mxu3 %v2831_v16 }
 0x735   : > { %v2585_v34 = vmul.f32 %v4381_v57, %v2578_v15  ;;  %v2641_v1 = vmul.f32 %v4384_v56, %v2634_v8  ;;  %v2709_v43 = vmul.f32 %v4390_v25, %v2702_v14  ;;  %v2675_v17 = vmul.f32 %v2673_v26, %v2668_v18  ;;  %v2892_v14 = vld [vmem:[#allocation2 + $0x4e8] sm:$0x1] }
 0x736   : > { %2848 = vmatpush.msrb.mxu3 %v2830_v32 }
 0x737   : > { %3228 = vmatmul.msk.f32.vlgmr.msra.gmra.mxu2 %vm2364_vm11, %v2585_v34  ;;  %3230 = vmatmul.msk.f32.vlgmr.msra.gmra.mxu1 %vm2364_vm11, %v2641_v1 }
 0x738   : > { %2817 = vmatpush.msra.mxu2 %v2801_v9  ;;  %2849 = vmatpush.msrb.mxu3 %v2829_v2 }
 0x73a   : > { %2818 = vmatpush.msra.mxu2 %v2800_v41  ;;  %2850 = vmatpush.msrb.mxu3 %v2828_v62 }
 0x73b   : > { %3232 = vmatmul.msk.f32.vlgmr.msra.gmra.mxu3 %vm2364_vm11, %v2709_v43  ;;  %v2946_v43 = vld [vmem:[#allocation2 + $0x240] sm:$0xff] }
 0x73c   : > { %2819 = vmatpush.msra.mxu2 %v2799_v21 }
 0x73e   : > { %2820 = vmatpush.msra.mxu2 %v2798_v27 }
 0x73f   : > { %3231 = vmatmul.msk.f32.vlgmr.msrb.gmra.mxu2 %vm2364_vm11, %v2675_v17  ;;  %v2920_v17 = vld [vmem:[#allocation2 + $0x230] sm:$0x1] }
 0x740   : > { %2936 = vmatpush.msrb.mxu2 %v2919_v5 }
 0x742   : > { %2937 = vmatpush.msrb.mxu2 %v2918_v11 }
 0x744   : > { %2938 = vmatpush.msrb.mxu2 %v2917_v19 }
 0x746   : > { %2939 = vmatpush.msrb.mxu2 %v2916_v24 }
 0x7b4   : > { %v2664_v39 = vpop.f32.mrf.mxu1 }
 0x7b6   : > { %v2631_v46 = vpop.f32.mrf.mxu3 }
 0x7ba   : > { %v2608_v29 = vpop.f32.mrf.mxu2 }
 0x7bb   : > { %v2632_v42 = vadd.f32 %v2631_v46, %v2608_v29 }
 0x7bd   : > { %v2667_v50 = vadd.f32 %v2664_v39, %v2632_v42 }
 0x7be   : > { %v2732_v53 = vpop.f32.mrf.mxu3 }
 0x7c2   : > { %v2698_v58 = vpop.f32.mrf.mxu2 }
 0x7c3   : > { %v2701_v38 = vadd.f32 %v2698_v58, %v2667_v50 }
 0x7c5   : > { %v2735_v44 = vadd.f32 %v2732_v53, %v2701_v38 }
 0x7c7   : > { %v2738_v6 = vadd.f32 %v3307_v7, %v2735_v44 }
 0x7c9   : > { %v2739_v13 = vmax.f32 %v2738_v6, 0.0 }
 0x7cb   : > { %v2744_v20 = vrot.slane %v2739_v13, 6  ;;  %v2796_v35 = vrot.slane %v2739_v13, 7  ;;  %v2826_v55 = vrot.slane %v2739_v13, 1  ;;  %3234 = vmatmul.msk.f32.vlgmr.msrb.gmra.mxu1 %vm2090_vm10, %v2739_v13  ;;  %v2856_v37 = vrot.slane %v2739_v13, 2 }
 0x7cd   : > { %v2745_v45 = vmul.f32 %v2744_v20, %v4381_v57  ;;  %v2797_v60 = vmul.f32 %v2796_v35, %v4384_v56  ;;  %v2827_v59 = vmul.f32 %v2826_v55, %v2673_v26  ;;  %v2857_v47 = vmul.f32 %v2856_v37, %v4390_v25  ;;  %v3308_v57 = vld [vmem:[#allocation2 + $0x208] ss:$0 sm:$0xff]  ;;  %v2945_v26 = vld [vmem:[#allocation2 + $0x238] sm:$0xff] }
 0x7ce   : > { %v2947_v25 = vld [vmem:[#allocation2 + $0x248] sm:$0xf] }
 0x7cf   : > { %3233 = vmatmul.msk.f32.vlgmr.msra.gmra.mxu0 %vm2090_vm10, %v2745_v45  ;;  %3235 = vmatmul.msk.f32.vlgmr.msra.gmra.mxu2 %vm2090_vm10, %v2797_v60 }
 0x7d0   : > { %3236 = vmatmul.msk.f32.vlgmr.msrb.gmra.mxu3 %vm2090_vm10, %v2827_v59 }
 0x7d1   : > { %3240 = vmatpush.msk.msra.mxu3 %vm900_vm6, %v2947_v25 }
 0x7d3   : > { %2970 = vmatpush.msra.mxu3 %v2946_v43 }
 0x7d5   : > { %2971 = vmatpush.msra.mxu3 %v2945_v26 }
 0x7d7   : > { %3237 = vmatmul.msk.f32.vlgmr.msrb.gmra.mxu0 %vm2090_vm10, %v2857_v47 }
 0x848   : > { %v2793_v22 = vpop.f32.mrf.mxu1 }
 0x84c   : > { %v2770_v28 = vpop.f32.mrf.mxu0 }
 0x84d   : > { %v2794_v23 = vadd.f32 %v2793_v22, %v2770_v28 }
 0x852   : > { %v2822_v48 = vpop.f32.mrf.mxu2 }
 0x853   : > { %v2825_v51 = vadd.f32 %v2822_v48, %v2794_v23  ;;  %v2852_v63 = vpop.f32.mrf.mxu3 }
 0x854   : > { %v2882_v36 = vpop.f32.mrf.mxu0 }
 0x855   : > { %v2855_v61 = vadd.f32 %v2852_v63, %v2825_v51 }
 0x857   : > { %v2885_v15 = vadd.f32 %v2882_v36, %v2855_v61 }
 0x859   : > { %v2888_v8 = vadd.f32 %v3308_v57, %v2885_v15 }
 0x85b   : > { %v2889_v56 = vmax.f32 %v2888_v8, 0.0 }
 0x85d   : > { %v2890_v34 = vrot.slane %v2889_v56, 1 }
 0x85f   : > { %v2891_v1 = vmax.f32 %v2889_v56, %v2890_v34 }
 0x861   : > { %2911 = vmatpush.msra.mxu1 %v2891_v1 }
 0x862   : > { %3238 = vmatmul.msk.f32.vlgmr.msra.gmra.mxu1 %vm1809_vm9, %v2892_v14 }
 0x8df   : > { %v2913_v18 = vpop.f32.mrf.mxu1 }
 0x8e0   : > { %3239 = vmatmul.msk.f32.vlgmr.msrb.gmra.mxu2 %vm2090_vm10, %v2913_v18 }
 0x963   : > { %v2941_v30 = vpop.f32.mrf.mxu2 }
 0x964   : > { %v2942_v40 = vadd.f32 %v2941_v30, %v2920_v17 }
 0x966   : > { %v2944_v33 = vmax.f32 %v2942_v40, 0.0 }
 0x968   : > { %3241 = vmatmul.msk.f32.vlgmr.msra.gmra.mxu3 %vm2949_vm12, %v2944_v33 }
 0x9eb   : > { %v2973_v9 = vpop.f32.mrf.mxu3 }
 0x9ec   : > { %v2974_v16 = vadd.f32 %v2973_v9, %v2948_v49 }
 0x9ee   : > { %2977 = vst.msk [vmem:[%s152_s14] sm:$0x1] %vm2976_vm13, %v2974_v16 }
 0x9ef   : > { %3366 = shalt.err (!%p3363_p8)
}
 0x9f0   : > { %3249 = dma.vmem_to_hbm [thread:$0]  (%p3464_p5), %s2990_s16, 16, %s2992_s17, %s2979_s21  }
 0x9f1 PF: > { %p3261_p9 = scmp.ge.s32.totalorder %s3405_s12, 2  ;;  %s3003_s28 = sand.u32 1, %s3393_s9  }
 0x9f2   : > { %s3004_s29 = scalar_lea.sflag [#allocation4], %s3003_s28 }
 0x9f3   : > { %p3256_p10 = pnand %p3261_p9, %p3468_p6 }
 0x9f5   : > { %p3257_p11 = pneg %p3256_p10 }
 0x9f7   : > { %3388 = dma.done.wait (%p3257_p11), %s3004_s29, 16  }
 0x9f8   : > { %3390 = vsyncadd (%p3257_p11), %s3004_s29, 4294967280  ;;  %p13_p12 = scmp.ge.s32.totalorder %s3451_s15, 4   ;;  %s4443_s9 = smov %s3397_s10 }
 0x9f9   : > { %s4444_s10 = smov %s3401_s11  ;;  %s4445_s11 = smov %s3462_s18 }
 0x9fa   : > { %s4446_s12 = smov %s3451_s15  ;;  %15 = sbr.rel (!%p13_p12) target bundleno = 4 (0x4), region = 68 }
 0x9ff   :  { %3009 = vsyncpa [#allocation3], 1 }
 0xa00   :  { %3011 = vsyncpa [#allocation3 + $0x1], 1 }
 0xa01   :  { %3012 = vsyncpa [#allocation4], 1 }
 0xa02   :  { %3014 = vsyncpa [#allocation4 + $0x1], 1 }

</bundles_post_ra>
